<compile_context>
chip_gen: v6e
topology: v6e:2x2x1
jax: 0.10.0
libtpu: 0.0.40
codegen_flags: <defaults>
</compile_context>

<pallas_src>
import jax
import jax.numpy as jnp
from jax.experimental import pallas as pl
from jax.experimental.pallas import tpu as pltpu

HIDDEN = 400   # logical hidden size (PyTorch module)
HP = 512       # lane-aligned padded hidden size used inside the kernel


def _round_up(x, m):
    return (x + m - 1) // m * m


def _cdiv(a, b):
    return (a + b - 1) // b


def _pad2d(x, rows, cols):
    out = jnp.zeros((rows, cols), x.dtype)
    return out.at[: x.shape[0], : x.shape[1]].set(x)


# ----------------------------------------------------------------------------- kernel
def _critic_kernel(s_ref, a_ref, w1s_ref, w1a_ref, b1_ref,
                   w12_ref, w22_ref, b2_ref, w3_ref, b3_ref, q_ref):
    hp = w12_ref.shape[0]          # padded hidden size (512)
    cdtype = w12_ref.dtype         # MXU input dtype for the wide layers (bf16)

    s = s_ref[...].astype(cdtype)  # (TB, S)
    a = a_ref[...].astype(cdtype)  # (TB, A)

    # Fused layer-1 of both Q branches; w1 split by rows so no xu concat is needed.
    h = (jnp.dot(s, w1s_ref[...], preferred_element_type=jnp.float32)
         + jnp.dot(a, w1a_ref[...], preferred_element_type=jnp.float32)
         + b1_ref[...])
    h = jnp.maximum(h, 0.0).astype(cdtype)     # (TB, 2*HP) bf16
    h1 = h[:, :hp]                             # branch-1 activations
    h2 = h[:, hp:]                             # branch-2 activations

    # Layer 2 (separate per branch: different inputs).
    g1 = jnp.dot(h1, w12_ref[...], preferred_element_type=jnp.float32) + b2_ref[:, :hp]
    g2 = jnp.dot(h2, w22_ref[...], preferred_element_type=jnp.float32) + b2_ref[:, hp:]
    g1 = jnp.maximum(g1, 0.0)                  # stay f32 for the (tiny) head
    g2 = jnp.maximum(g2, 0.0)

    # Fused heads on the block-structured (2*HP, 2) weight, split by rows (no concat buffer).
    # q[:, 0] = Q1, q[:, 1] = Q2.
    q = (jnp.dot(g1, w3_ref[:hp, :], preferred_element_type=jnp.float32)
         + jnp.dot(g2, w3_ref[hp:, :], preferred_element_type=jnp.float32)
         + b3_ref[...])
    q_ref[...] = q.astype(q_ref.dtype)


# ----------------------------------------------------------------------------- tiling
def _choose_tile(B, tb_max=1024, split_threshold=512):
    """Batch tile size. Small batches: one 16-aligned tile. Large batches: balanced tiles
    with an even (>=2) grid-step count so both v7x TensorCores get work."""
    if B <= split_threshold:
        return _round_up(max(B, 1), 16)
    n_tiles = _round_up(max(2, _cdiv(B, tb_max)), 2)
    return _round_up(_cdiv(B, n_tiles), 16)


# ----------------------------------------------------------------------------- wrapper
def critic_forward(state, action, packed, *, tb_max=1024):
    """Compute (Q1, Q2) for a batch of (state, action) pairs with packed params."""
    B, S = state.shape
    A = action.shape[1]
    in_dim = S + A

    TB = _choose_tile(B, tb_max)
    Bp = _round_up(B, TB)
    if Bp != B:
        state = jnp.pad(state, ((0, Bp - B), (0, 0)))
        action = jnp.pad(action, ((0, Bp - B), (0, 0)))

    def full(shape):
        # Weights/biases: constant block index -> DMA'd once, VMEM-resident across steps.
        return pl.BlockSpec(shape, lambda i: (0, 0))

    in_specs = [
        pl.BlockSpec((TB, S), lambda i: (i, 0)),   # state: streamed per batch tile
        pl.BlockSpec((TB, A), lambda i: (i, 0)),   # action: streamed per batch tile
        full(packed["w1s"].shape), full(packed["w1a"].shape), full(packed["b1"].shape),
        full(packed["w12"].shape), full(packed["w22"].shape), full(packed["b2"].shape),
        full(packed["w3"].shape), full(packed["b3"].shape),
    ]
    out_specs = pl.BlockSpec((TB, 2), lambda i: (i, 0))
    out_shape = jax.ShapeDtypeStruct((Bp, 2), jnp.float32)

    # Advisory cost estimate so XLA can overlap surrounding ops with the kernel.
    flops = 2 * Bp * (in_dim * 2 * HP + 2 * HP * HP + 2 * HP * 2)
    weight_bytes = sum(
        int(packed[k].size) * packed[k].dtype.itemsize
        for k in ("w1s", "w1a", "b1", "w12", "w22", "b2", "w3", "b3"))
    bytes_accessed = weight_bytes + Bp * in_dim * 4 + Bp * 2 * 4

    q = pl.pallas_call(
        _critic_kernel,
        grid=(Bp // TB,),
        in_specs=in_specs,
        out_specs=out_specs,
        out_shape=out_shape,
        compiler_params=pltpu.CompilerParams(
            dimension_semantics=("parallel",),
        ),
        cost_estimate=pl.CostEstimate(
            flops=flops, transcendentals=0, bytes_accessed=bytes_accessed),
    )(state, action,
      packed["w1s"], packed["w1a"], packed["b1"],
      packed["w12"], packed["w22"], packed["b2"],
      packed["w3"], packed["b3"])

    q = q[:B]
    return q[:, 0:1], q[:, 1:2]


# ----------------------------------------------------------------------------- params
def init_params(key, state_size, action_size):
    """PyTorch-like nn.Linear init. Weights stored as (in_features, out_features)."""
    in_dim = state_size + action_size
    layer_dims = [
        ("11", in_dim, HIDDEN), ("12", HIDDEN, HIDDEN), ("13", HIDDEN, 1),
        ("21", in_dim, HIDDEN), ("22", HIDDEN, HIDDEN), ("23", HIDDEN, 1),
    ]
    params = {}
    for name, fan_in, fan_out in layer_dims:
        key, kw, kb = jax.random.split(key, 3)
        bound = 1.0 / jnp.sqrt(jnp.float32(fan_in))
        params[f"w{name}"] = jax.random.uniform(
            kw, (fan_in, fan_out), jnp.float32, minval=-bound, maxval=bound)
        params[f"b{name}"] = jax.random.uniform(
            kb, (1, fan_out), jnp.float32, minval=-bound, maxval=bound)
    return params


def pack_params(params, state_size, dtype=jnp.bfloat16):
    """Fuse/pad parameters for the kernel: lane-aligned hidden, fused layer-1 (rows split by
    state/action) and a block-structured fused head. Head weights stay f32."""
    in_dim = params["w11"].shape[0]
    w1 = jnp.concatenate(
        [_pad2d(params["w11"], in_dim, HP), _pad2d(params["w21"], in_dim, HP)], axis=1)
    w1s = w1[:state_size].astype(dtype)                               # (S, 2*HP)
    w1a = w1[state_size:].astype(dtype)                               # (A, 2*HP)
    b1 = jnp.concatenate(
        [_pad2d(params["b11"], 1, HP), _pad2d(params["b21"], 1, HP)], axis=1
    ).astype(jnp.float32)                                             # (1, 2*HP)
    w12 = _pad2d(params["w12"], HP, HP).astype(dtype)                 # (HP, HP)
    w22 = _pad2d(params["w22"], HP, HP).astype(dtype)                 # (HP, HP)
    b2 = jnp.concatenate(
        [_pad2d(params["b12"], 1, HP), _pad2d(params["b22"], 1, HP)], axis=1
    ).astype(jnp.float32)                                             # (1, 2*HP)
    w3 = jnp.zeros((2 * HP, 2), jnp.float32)
    w3 = w3.at[:HIDDEN, 0:1].set(params["w13"])
    w3 = w3.at[HP:HP + HIDDEN, 1:2].set(params["w23"])                # (2*HP, 2), f32 head
    b3 = jnp.concatenate([params["b13"], params["b23"]], axis=1).astype(jnp.float32)
    return {"w1s": w1s, "w1a": w1a, "b1": b1, "w12": w12, "w22": w22,
            "b2": b2, "w3": w3, "b3": b3}


# ----------------------------------------------------------------------------- reference
def _reference_forward(state, action, params, compute_dtype=jnp.float32):
    """Plain-JAX reference. compute_dtype=float32 -> exact PyTorch semantics;
    compute_dtype=bfloat16 -> mimics the kernel's bf16 weight/activation rounding
    (layer-1/2 in bf16, head kept in f32, f32 accumulation)."""
    hi = jax.lax.Precision.HIGHEST
    mm = lambda x, w: jnp.dot(x, w, precision=hi)
    c = lambda x: x.astype(compute_dtype).astype(jnp.float32)
    xu = c(jnp.concatenate([state, action], axis=1))

    def branch(wa, ba, wb, bb, wc, bc):
        h = c(jax.nn.relu(mm(xu, c(wa)) + ba))
        g = jax.nn.relu(mm(h, c(wb)) + bb)
        return mm(g, wc) + bc

    q1 = branch(params["w11"], params["b11"], params["w12"], params["b12"],
                params["w13"], params["b13"])
    q2 = branch(params["w21"], params["b21"], params["w22"], params["b22"],
                params["w23"], params["b23"])
    return q1, q2


# ----------------------------------------------------------------------------- main
if __name__ == "__main__":
    key = jax.random.PRNGKey(0)
    state_size, action_size = 8, 4
    key, ks, ka, kp = jax.random.split(key, 4)
    params = init_params(kp, state_size, action_size)
    packed = pack_params(params, state_size, dtype=jnp.bfloat16)

    # Small demo batch (single 16-row tile).
    B = 2
    state = jax.random.normal(ks, (B, state_size), jnp.float32)
    action = jax.random.normal(ka, (B, action_size), jnp.float32)

    q1, q2 = critic_forward(state, action, packed)
    q1 = jax.block_until_ready(q1)
    q2 = jax.block_until_ready(q2)
    assert q1.shape == (B, 1) and q2.shape == (B, 1)

    # Compare against the dtype-matched reference (kernel correctness)...
    r1m, r2m = _reference_forward(state, action, params, compute_dtype=jnp.bfloat16)
    assert jnp.allclose(q1, r1m, atol=1e-2, rtol=1e-2)
    assert jnp.allclose(q2, r2m, atol=1e-2, rtol=1e-2)
    # ...and against the exact f32 PyTorch semantics (bf16 quantization tolerance).
    r1, r2 = _reference_forward(state, action, params, compute_dtype=jnp.float32)
    assert jnp.allclose(q1, r1, atol=5e-2, rtol=5e-2)
    assert jnp.allclose(q2, r2, atol=5e-2, rtol=5e-2)

    # Larger batch exercises the balanced multi-tile grid (2 grid steps, padded batch).
    B2 = 1200
    kb1, kb2 = jax.random.split(key)
    state2 = jax.random.normal(kb1, (B2, state_size), jnp.float32)
    action2 = jax.random.normal(kb2, (B2, action_size), jnp.float32)
    p1, p2 = critic_forward(state2, action2, packed)
    p1 = jax.block_until_ready(p1)
    p2 = jax.block_until_ready(p2)
    s1, s2 = _reference_forward(state2, action2, params, compute_dtype=jnp.bfloat16)
    assert p1.shape == (B2, 1) and p2.shape == (B2, 1)
    assert jnp.allclose(p1, s1, atol=1e-2, rtol=1e-2)
    assert jnp.allclose(p2, s2, atol=1e-2, rtol=1e-2)

    print("KERNEL_OK")
</pallas_src>

<mosaic_0001>
module attributes {stable_mosaic.version = 11 : i64} {
  func.func @_critic_kernel(%arg0: i32, %arg1: memref<16x8xf32, #tpu.memory_space<vmem>>, %arg2: memref<16x4xf32, #tpu.memory_space<vmem>>, %arg3: memref<8x1024xbf16, #tpu.memory_space<vmem>>, %arg4: memref<4x1024xbf16, #tpu.memory_space<vmem>>, %arg5: memref<1x1024xf32, #tpu.memory_space<vmem>>, %arg6: memref<512x512xbf16, #tpu.memory_space<vmem>>, %arg7: memref<512x512xbf16, #tpu.memory_space<vmem>>, %arg8: memref<1x1024xf32, #tpu.memory_space<vmem>>, %arg9: memref<1024x2xf32, #tpu.memory_space<vmem>>, %arg10: memref<1x2xf32, #tpu.memory_space<vmem>>, %arg11: memref<16x2xf32, #tpu.memory_space<vmem>>) attributes {dimension_semantics = [#tpu.dimension_semantics<parallel>], iteration_bounds = array<i64: 1>, scalar_prefetch = 0 : i64, scratch_operands = 0 : i64, tpu.core_type = #tpu.core_type<tc>, window_params = [{transform_indices = @transform_0, window_bounds = array<i64: 16, 8>}, {transform_indices = @transform_1, window_bounds = array<i64: 16, 4>}, {pipeline_mode = #tpu.pipeline_mode<synchronous>, transform_indices = @transform_2, window_bounds = array<i64: 8, 1024>}, {pipeline_mode = #tpu.pipeline_mode<synchronous>, transform_indices = @transform_3, window_bounds = array<i64: 4, 1024>}, {pipeline_mode = #tpu.pipeline_mode<synchronous>, transform_indices = @transform_4, window_bounds = array<i64: 1, 1024>}, {pipeline_mode = #tpu.pipeline_mode<synchronous>, transform_indices = @transform_5, window_bounds = array<i64: 512, 512>}, {pipeline_mode = #tpu.pipeline_mode<synchronous>, transform_indices = @transform_6, window_bounds = array<i64: 512, 512>}, {pipeline_mode = #tpu.pipeline_mode<synchronous>, transform_indices = @transform_7, window_bounds = array<i64: 1, 1024>}, {pipeline_mode = #tpu.pipeline_mode<synchronous>, transform_indices = @transform_8, window_bounds = array<i64: 1024, 2>}, {pipeline_mode = #tpu.pipeline_mode<synchronous>, transform_indices = @transform_9, window_bounds = array<i64: 1, 2>}, {transform_indices = @transform_10, window_bounds = array<i64: 16, 2>}]} {
    %c0 = arith.constant 0 : index
    %c0_0 = arith.constant 0 : index
    %0 = vector.load %arg1[%c0, %c0_0] : memref<16x8xf32, #tpu.memory_space<vmem>>, vector<16x8xf32>
    %1 = arith.truncf %0 : vector<16x8xf32> to vector<16x8xbf16>
    %c0_1 = arith.constant 0 : index
    %c0_2 = arith.constant 0 : index
    %2 = vector.load %arg2[%c0_1, %c0_2] : memref<16x4xf32, #tpu.memory_space<vmem>>, vector<16x4xf32>
    %3 = arith.truncf %2 : vector<16x4xf32> to vector<16x4xbf16>
    %c0_3 = arith.constant 0 : index
    %c0_4 = arith.constant 0 : index
    %4 = vector.load %arg3[%c0_3, %c0_4] : memref<8x1024xbf16, #tpu.memory_space<vmem>>, vector<8x1024xbf16>
    %cst = arith.constant dense<0.000000e+00> : vector<16x1024xf32>
    %5 = tpu.matmul %1, %4, %cst {dimension_numbers = #tpu.dot_dimension_numbers<[1], [0], [0], [1], [0, 0, 1, 1], [], []>} : vector<16x8xbf16>, vector<8x1024xbf16>, vector<16x1024xf32> -> vector<16x1024xf32>
    %c0_5 = arith.constant 0 : index
    %c0_6 = arith.constant 0 : index
    %6 = vector.load %arg4[%c0_5, %c0_6] : memref<4x1024xbf16, #tpu.memory_space<vmem>>, vector<4x1024xbf16>
    %cst_7 = arith.constant dense<0.000000e+00> : vector<16x1024xf32>
    %7 = tpu.matmul %3, %6, %cst_7 {dimension_numbers = #tpu.dot_dimension_numbers<[1], [0], [0], [1], [0, 0, 1, 1], [], []>} : vector<16x4xbf16>, vector<4x1024xbf16>, vector<16x1024xf32> -> vector<16x1024xf32>
    %8 = arith.addf %5, %7 : vector<16x1024xf32>
    %c0_8 = arith.constant 0 : index
    %c0_9 = arith.constant 0 : index
    %9 = vector.load %arg5[%c0_8, %c0_9] : memref<1x1024xf32, #tpu.memory_space<vmem>>, vector<1x1024xf32>
    %10 = vector.broadcast %9 : vector<1x1024xf32> to vector<16x1024xf32>
    %11 = arith.addf %8, %10 : vector<16x1024xf32>
    %cst_10 = arith.constant 0.000000e+00 : f32
    %12 = vector.broadcast %cst_10 : f32 to vector<16x1024xf32>
    %13 = arith.maximumf %11, %12 : vector<16x1024xf32>
    %14 = arith.truncf %13 : vector<16x1024xf32> to vector<16x1024xbf16>
    %15 = vector.extract_strided_slice %14 {offsets = [0, 0], sizes = [16, 512], strides = [1, 1]} : vector<16x1024xbf16> to vector<16x512xbf16>
    %16 = vector.extract_strided_slice %14 {offsets = [0, 512], sizes = [16, 512], strides = [1, 1]} : vector<16x1024xbf16> to vector<16x512xbf16>
    %c0_11 = arith.constant 0 : index
    %c0_12 = arith.constant 0 : index
    %17 = vector.load %arg6[%c0_11, %c0_12] : memref<512x512xbf16, #tpu.memory_space<vmem>>, vector<512x512xbf16>
    %cst_13 = arith.constant dense<0.000000e+00> : vector<16x512xf32>
    %18 = tpu.matmul %15, %17, %cst_13 {dimension_numbers = #tpu.dot_dimension_numbers<[1], [0], [0], [1], [0, 0, 1, 1], [], []>} : vector<16x512xbf16>, vector<512x512xbf16>, vector<16x512xf32> -> vector<16x512xf32>
    %c0_14 = arith.constant 0 : index
    %c0_15 = arith.constant 0 : index
    %19 = vector.load %arg8[%c0_14, %c0_15] : memref<1x1024xf32, #tpu.memory_space<vmem>>, vector<1x512xf32>
    %20 = vector.broadcast %19 : vector<1x512xf32> to vector<16x512xf32>
    %21 = arith.addf %18, %20 : vector<16x512xf32>
    %c0_16 = arith.constant 0 : index
    %c0_17 = arith.constant 0 : index
    %22 = vector.load %arg7[%c0_16, %c0_17] : memref<512x512xbf16, #tpu.memory_space<vmem>>, vector<512x512xbf16>
    %cst_18 = arith.constant dense<0.000000e+00> : vector<16x512xf32>
    %23 = tpu.matmul %16, %22, %cst_18 {dimension_numbers = #tpu.dot_dimension_numbers<[1], [0], [0], [1], [0, 0, 1, 1], [], []>} : vector<16x512xbf16>, vector<512x512xbf16>, vector<16x512xf32> -> vector<16x512xf32>
    %c0_19 = arith.constant 0 : index
    %c512 = arith.constant 512 : index
    %24 = vector.load %arg8[%c0_19, %c512] : memref<1x1024xf32, #tpu.memory_space<vmem>>, vector<1x512xf32>
    %25 = vector.broadcast %24 : vector<1x512xf32> to vector<16x512xf32>
    %26 = arith.addf %23, %25 : vector<16x512xf32>
    %cst_20 = arith.constant 0.000000e+00 : f32
    %27 = vector.broadcast %cst_20 : f32 to vector<16x512xf32>
    %28 = arith.maximumf %21, %27 : vector<16x512xf32>
    %cst_21 = arith.constant 0.000000e+00 : f32
    %29 = vector.broadcast %cst_21 : f32 to vector<16x512xf32>
    %30 = arith.maximumf %26, %29 : vector<16x512xf32>
    %c0_22 = arith.constant 0 : index
    %c0_23 = arith.constant 0 : index
    %31 = vector.load %arg9[%c0_22, %c0_23] : memref<1024x2xf32, #tpu.memory_space<vmem>>, vector<512x2xf32>
    %cst_24 = arith.constant dense<0.000000e+00> : vector<16x2xf32>
    %32 = tpu.matmul %28, %31, %cst_24 {dimension_numbers = #tpu.dot_dimension_numbers<[1], [0], [0], [1], [0, 0, 1, 1], [], []>} : vector<16x512xf32>, vector<512x2xf32>, vector<16x2xf32> -> vector<16x2xf32>
    %c512_25 = arith.constant 512 : index
    %c0_26 = arith.constant 0 : index
    %33 = vector.load %arg9[%c512_25, %c0_26] : memref<1024x2xf32, #tpu.memory_space<vmem>>, vector<512x2xf32>
    %cst_27 = arith.constant dense<0.000000e+00> : vector<16x2xf32>
    %34 = tpu.matmul %30, %33, %cst_27 {dimension_numbers = #tpu.dot_dimension_numbers<[1], [0], [0], [1], [0, 0, 1, 1], [], []>} : vector<16x512xf32>, vector<512x2xf32>, vector<16x2xf32> -> vector<16x2xf32>
    %35 = arith.addf %32, %34 : vector<16x2xf32>
    %c0_28 = arith.constant 0 : index
    %c0_29 = arith.constant 0 : index
    %36 = vector.load %arg10[%c0_28, %c0_29] : memref<1x2xf32, #tpu.memory_space<vmem>>, vector<1x2xf32>
    %37 = vector.broadcast %36 : vector<1x2xf32> to vector<16x2xf32>
    %38 = arith.addf %35, %37 : vector<16x2xf32>
    %c0_30 = arith.constant 0 : index
    %c0_31 = arith.constant 0 : index
    %39 = vector.load %arg11[%c0_30, %c0_31] : memref<16x2xf32, #tpu.memory_space<vmem>>, vector<16x2xf32>
    tpu.vector_store %arg11[%c0_30, %c0_31], %38 {strides = array<i32>} : memref<16x2xf32, #tpu.memory_space<vmem>>, vector<16x2xf32>,
    return
  }
  func.func @transform_0(%arg0: i32) -> (i32, i32) {
    %c0_i32 = arith.constant 0 : i32
    %c0_i32_0 = arith.constant 0 : i32
    return %arg0, %c0_i32 : i32, i32
  }
  func.func @transform_1(%arg0: i32) -> (i32, i32) {
    %c0_i32 = arith.constant 0 : i32
    %c0_i32_0 = arith.constant 0 : i32
    return %arg0, %c0_i32 : i32, i32
  }
  func.func @transform_2(%arg0: i32) -> (i32, i32) {
    %c0_i32 = arith.constant 0 : i32
    %c0_i32_0 = arith.constant 0 : i32
    %c0_i32_1 = arith.constant 0 : i32
    return %c0_i32, %c0_i32_0 : i32, i32
  }
  func.func @transform_3(%arg0: i32) -> (i32, i32) {
    %c0_i32 = arith.constant 0 : i32
    %c0_i32_0 = arith.constant 0 : i32
    %c0_i32_1 = arith.constant 0 : i32
    return %c0_i32, %c0_i32_0 : i32, i32
  }
  func.func @transform_4(%arg0: i32) -> (i32, i32) {
    %c0_i32 = arith.constant 0 : i32
    %c0_i32_0 = arith.constant 0 : i32
    %c0_i32_1 = arith.constant 0 : i32
    return %c0_i32, %c0_i32_0 : i32, i32
  }
  func.func @transform_5(%arg0: i32) -> (i32, i32) {
    %c0_i32 = arith.constant 0 : i32
    %c0_i32_0 = arith.constant 0 : i32
    %c0_i32_1 = arith.constant 0 : i32
    return %c0_i32, %c0_i32_0 : i32, i32
  }
  func.func @transform_6(%arg0: i32) -> (i32, i32) {
    %c0_i32 = arith.constant 0 : i32
    %c0_i32_0 = arith.constant 0 : i32
    %c0_i32_1 = arith.constant 0 : i32
    return %c0_i32, %c0_i32_0 : i32, i32
  }
  func.func @transform_7(%arg0: i32) -> (i32, i32) {
    %c0_i32 = arith.constant 0 : i32
    %c0_i32_0 = arith.constant 0 : i32
    %c0_i32_1 = arith.constant 0 : i32
    return %c0_i32, %c0_i32_0 : i32, i32
  }
  func.func @transform_8(%arg0: i32) -> (i32, i32) {
    %c0_i32 = arith.constant 0 : i32
    %c0_i32_0 = arith.constant 0 : i32
    %c0_i32_1 = arith.constant 0 : i32
    return %c0_i32, %c0_i32_0 : i32, i32
  }
  func.func @transform_9(%arg0: i32) -> (i32, i32) {
    %c0_i32 = arith.constant 0 : i32
    %c0_i32_0 = arith.constant 0 : i32
    %c0_i32_1 = arith.constant 0 : i32
    return %c0_i32, %c0_i32_0 : i32, i32
  }
  func.func @transform_10(%arg0: i32) -> (i32, i32) {
    %c0_i32 = arith.constant 0 : i32
    %c0_i32_0 = arith.constant 0 : i32
    return %arg0, %c0_i32 : i32, i32
  }
}

</mosaic_0001>

<bundles_post_ra>
// kernel: tpu_custom_call.1
= control target key start
LH: loop header
LB: loop body
LE: loop exit
PB: predicated region body
PF: predicated region fallthrough
CT: control target
= control target key end

     0   :  { %15 = vsyncpa [#allocation3], 0  ;;  %s4941_s0 = inlined_call_operand.vmem [shape: f32[16,8], index: 0, kind: input, shape index: {}]   ;;  %s4942_s1 = inlined_call_operand.vmem [shape: f32[16,4], index: 1, kind: input, shape index: {}]   ;;  %s4943_s2 = inlined_call_operand.vmem [shape: bf16[8,1024], index: 2, kind: input, shape index: {}]   ;;  %s4944_s3 = inlined_call_operand.vmem [shape: bf16[4,1024], index: 3, kind: input, shape index: {}]   ;;  %s4945_s4 = inlined_call_operand.hbm [shape: f32[1,1024], index: 4, kind: input, shape index: {}]   ;;  %s4946_s5 = inlined_call_operand.vmem [shape: bf16[512,512], index: 5, kind: input, shape index: {}]   ;;  %s4947_s6 = inlined_call_operand.hbm [shape: bf16[512,512], index: 6, kind: input, shape index: {}]   ;;  %s4948_s7 = inlined_call_operand.hbm [shape: f32[1,1024], index: 7, kind: input, shape index: {}]   ;;  %s4949_s8 = inlined_call_operand.vmem [shape: f32[1024,2], index: 8, kind: input, shape index: {}]   ;;  %s4950_s9 = inlined_call_operand.vmem [shape: f32[1,2], index: 9, kind: input, shape index: {}]   ;;  %s4951_s10 = inlined_call_operand.vmem [shape: f32[16,2], index: 10, kind: output, shape index: {}]  }
   0x1   :  { %16 = vsyncpa [#allocation5], 0  ;;  %s3909_s13 = smov [#allocation4]  }
   0x2   :  { %s42_s14 = sshll.u32 %s3909_s13, 4  ;;  %s43_s14 = int_to_ptr.vmem [resolvable:$true] %s42_s14 }
   0x3   :  { %s3853_s15 = scalar_lea.vmem %s43_s14, 16384  ;;  %p3858_p1 = scmp.lt.s32.totalorder %s43_s14, %s43_s14 }
   0x4   :  { %p3854_p0 = scmp.ne.s32.totalorder %s43_s14, %s3853_s15  ;;  %p3859_p2 = scmp.lt.s32.totalorder %s3853_s15, %s3853_s15 }
   0x6   :  { %p3860_p3 = por %p3859_p2, %p3858_p1 }
   0x8   :  { %p3861_p4 = pnand %p3860_p3, %p3854_p0 }
   0xa   :  { %3864 = shalt.err (!%p3861_p4)
}
   0xb   :  { %s3910_s16 = smov 256   ;;  %s3911_s17 = smov 16  }
   0xc   :  { %48 = dma.hbm_to_vmem [thread:$0]  %s4947_s6, 16384, %s43_s14, [#allocation5], %s3910_s16, %s3910_s16, %s3911_s17  }
   0xd   :  { %s3912_s20 = smov [#allocation2]   ;;  %s3913_s22 = smov [#allocation6]  }
   0xe   :  { %s31_s21 = sshll.u32 %s3912_s20, 4  ;;  %s55_s23 = sshll.u32 %s3913_s22, 4  ;;  %s32_s21 = int_to_ptr.vmem [resolvable:$true] %s31_s21  ;;  %s56_s23 = int_to_ptr.vmem [resolvable:$true] %s55_s23 }
   0xf   :  { %s3873_s24 = scalar_lea.vmem %s32_s21, 128  ;;  %p3878_p6 = scmp.lt.s32.totalorder %s32_s21, %s32_s21 }
  0x10   :  { %p3874_p5 = scmp.ne.s32.totalorder %s32_s21, %s3873_s24  ;;  %p3879_p7 = scmp.lt.s32.totalorder %s3873_s24, %s3873_s24 }
  0x12   :  { %p3880_p8 = por %p3879_p7, %p3878_p6 }
  0x14   :  { %p3881_p9 = pnand %p3880_p8, %p3874_p5 }
  0x16   :  { %3884 = shalt.err (!%p3881_p9)
}
  0x17   :  { %34 = dma.hbm_to_vmem [thread:$0]  %s4945_s4, 128, %s32_s21, [#allocation3]  }
  0x18   :  { %s3893_s27 = scalar_lea.vmem %s56_s23, 128  ;;  %p3898_p11 = scmp.lt.s32.totalorder %s56_s23, %s56_s23 }
  0x19   :  { %p3894_p10 = scmp.ne.s32.totalorder %s56_s23, %s3893_s27  ;;  %p3899_p12 = scmp.lt.s32.totalorder %s3893_s27, %s3893_s27 }
  0x1b   :  { %p3900_p13 = por %p3899_p12, %p3898_p11 }
  0x1d   :  { %p3901_p0 = pnand %p3900_p13, %p3894_p10 }
  0x1f   :  { %3904 = shalt.err (!%p3901_p0)
}
  0x20   :  { %58 = dma.hbm_to_vmem [thread:$0]  %s4948_s7, 128, %s56_s23, [#allocation5]  }
  0x21   :  { %3905 = dma.done.wait [#allocation3], 128  }
  0x22   :  { %3906 = vsyncadd [#allocation3], 4294967168 }
  0x23   :  { %3907 = dma.done.wait [#allocation5], 16512  }
  0x24   :  { %3908 = vsyncadd [#allocation5], 4294950784  ;;  %v91_v0 = vlaneseq  ;;  %v3914_v1 = vmov 1983009808   ;;  %v3915_v3 = vmov 0   ;;  %v83_v7 = vld [vmem:[%s4944_s3] sm:$0xff] }
  0x25   :  { %v89_v2 = vunpack.c.l.s4 %v3914_v1  ;;  %182 = vmatprep.mubr.bf16.mxu0 %v3915_v3  ;;  %225 = vmatprep.mubr.bf16.mxu1 %v3915_v3  ;;  %vm125_vm0 = vcmask 1041408   ;;  %v87_v9 = vcombine.high %v83_v7, %v83_v7  ;;  %v84_v10 = vld [vmem:[%s4944_s3 + $0x8] sm:$0xff]  ;;  %v76_v11 = vld [vmem:[%s4942_s1] sm:$0xff]  ;;  %vm121_vm1 = vcmask 31744   ;;  %v81_v31 = vld [vmem:[%s4943_s2 + $0x10] sm:$0xff] }
  0x26   :  { %v3982_v4 = vshrl.u32 %v91_v0, 7  ;;  %v77_v12 = vld [vmem:[%s4942_s1 + $0x8] sm:$0xff]  ;;  %v104_v14 = vcombine.high %v84_v10, %v84_v10  ;;  %v79_v20 = vld [vmem:[%s4943_s2] sm:$0xff]  ;;  %vm346_vm2 = vcmask 1043456   ;;  %v82_v33 = vld [vmem:[%s4943_s2 + $0x18] sm:$0xff]  ;;  %v3024_v35 = vcombine.high %v81_v31, %v81_v31 }
  0x27   :  { %v90_v5 = vunpack.c.0.s8 %v89_v2  ;;  %v78_v23 = vpack.c.bf16 %v77_v12, %v76_v11  ;;  %v80_v25 = vld [vmem:[%s4943_s2 + $0x8] sm:$0xff]  ;;  %v3020_v27 = vcombine.high %v79_v20, %v79_v20  ;;  %v3019_v30 = vcombine.low %v79_v20, %v79_v20  ;;  %v73_v37 = vld [vmem:[%s4941_s0] sm:$0xff] }
  0x28   :  { %v3022_v29 = vcombine.high %v80_v25, %v80_v25  ;;  %v3021_v32 = vcombine.low %v80_v25, %v80_v25  ;;  %v3026_v38 = vcombine.high %v82_v33, %v82_v33  ;;  %v74_v39 = vld [vmem:[%s4941_s0 + $0x8] sm:$0xff]  ;;  %v3023_v40 = vcombine.low %v81_v31, %v81_v31  ;;  %v3463_v44 = vld [vmem:[%s4946_s5 + $0xe4] ss:$16 sps:$4 sm:$0xff]   ;;  %v3461_v47 = vld [vmem:[%s4946_s5 + $0xe0] ss:$16 sps:$4 sm:$0xff]  }
  0x29   :  { %v93_v6 = vsub.s32 %v90_v5, %v3982_v4  ;;  %v348_v34 = vsel %vm346_vm2, %v3019_v30, 0  ;;  %v75_v41 = vpack.c.bf16 %v74_v39, %v73_v37  ;;  %v3025_v42 = vcombine.low %v82_v33, %v82_v33  ;;  %v3466_v46 = vld [vmem:[%s4946_s5 + $0x2e4] ss:$16 sps:$4 sm:$0xff]   ;;  %v3464_v49 = vld [vmem:[%s4946_s5 + $0x2e0] ss:$16 sps:$4 sm:$0xff]  }
  0x2a   :  { %v354_v36 = vsel %vm346_vm2, %v3021_v32, 0  ;;  %vm342_vm3 = vcmask 64512   ;;  %v360_v43 = vsel %vm346_vm2, %v3023_v40, 0  ;;  %v3469_v48 = vld [vmem:[%s4946_s5 + $0xc4] ss:$16 sps:$4 sm:$0xff]   ;;  %vm3002_vm4 = vcmask 15360  }
  0x2b   :  { %v94_v8 = vrot.slane %v83_v7, %v93_v6  ;;  %v111_v13 = vrot.slane %v84_v10, %v93_v6  ;;  %v101_v17 = vrot.slane %v87_v9, %v93_v6  ;;  %v118_v19 = vrot.slane %v104_v14, %v93_v6  ;;  %v3472_v50 = vld [vmem:[%s4946_s5 + $0x2c4] ss:$16 sps:$4 sm:$0xff]   ;;  %v3467_v51 = vld [vmem:[%s4946_s5 + $0xc0] ss:$16 sps:$4 sm:$0xff]  }
  0x2c   :  { %v366_v45 = vsel %vm346_vm2, %v3025_v42, 0  ;;  %v3475_v52 = vld [vmem:[%s4946_s5 + $0xa4] ss:$16 sps:$4 sm:$0xff]   ;;  %v3470_v53 = vld [vmem:[%s4946_s5 + $0x2c0] ss:$16 sps:$4 sm:$0xff]  }
  0x2d   :  { %v102_v15 = vcombine.high %v94_v8, %v94_v8  ;;  %v127_v16 = vsel %vm125_vm0, %v94_v8, 0  ;;  %v119_v18 = vcombine.high %v111_v13, %v111_v13  ;;  %v103_v21 = vcombine.high %v101_v17, %v101_v17  ;;  %v3478_v54 = vld [vmem:[%s4946_s5 + $0x2a4] ss:$16 sps:$4 sm:$0xff]   ;;  %v3473_v55 = vld [vmem:[%s4946_s5 + $0xa0] ss:$16 sps:$4 sm:$0xff]  }
  0x2e   :  { %v133_v22 = vsel %vm125_vm0, %v101_v17, 0  ;;  %v120_v24 = vcombine.high %v118_v19, %v118_v19  ;;  %v139_v26 = vsel %vm125_vm0, %v111_v13, 0  ;;  %v145_v28 = vsel %vm125_vm0, %v118_v19, 0  ;;  %v3481_v56 = vld [vmem:[%s4946_s5 + $0x84] ss:$16 sps:$4 sm:$0xff]  }
  0x2f   :  { %3011 = vmatprep.subr.msk.bf16.mxu0 %vm125_vm0, %v102_v15  ;;  %3013 = vmatprep.subr.msk.bf16.mxu1 %vm125_vm0, %v103_v21  ;;  %v3476_v57 = vld [vmem:[%s4946_s5 + $0x2a0] ss:$16 sps:$4 sm:$0xff]   ;;  %v3484_v58 = vld [vmem:[%s4946_s5 + $0x284] ss:$16 sps:$4 sm:$0xff]  }
  0x30   :  { %165 = vmatpush1.bf16.msra.mxu0 %v127_v16  ;;  %208 = vmatpush1.bf16.msra.mxu1 %v133_v22  ;;  %v3479_v59 = vld [vmem:[%s4946_s5 + $0x80] ss:$16 sps:$4 sm:$0xff]   ;;  %v3487_v60 = vld [vmem:[%s4946_s5 + $0x64] ss:$16 sps:$4 sm:$0xff]  }
  0x31   :  { %3015 = vmatprep.subr.msk.bf16.mxu0 %vm125_vm0, %v119_v18  ;;  %3017 = vmatprep.subr.msk.bf16.mxu1 %vm125_vm0, %v120_v24  ;;  %v3482_v61 = vld [vmem:[%s4946_s5 + $0x280] ss:$16 sps:$4 sm:$0xff]   ;;  %v3490_v62 = vld [vmem:[%s4946_s5 + $0x264] ss:$16 sps:$4 sm:$0xff]  }
  0x32   :  { %v3485_v63 = vld [vmem:[%s4946_s5 + $0x60] ss:$16 sps:$4 sm:$0xff]   ;;  %v3493_v0 = vld [vmem:[%s4946_s5 + $0x44] ss:$16 sps:$4 sm:$0xff]  }
  0x33   :  { %3012 = vmatmul.mubr.msk.bf16.vlgmr.msra.gmra.mxu0 %vm121_vm1, %v78_v23  ;;  %3014 = vmatmul.mubr.msk.bf16.vlgmr.msra.gmra.mxu1 %vm121_vm1, %v78_v23  ;;  %v3488_v1 = vld [vmem:[%s4946_s5 + $0x260] ss:$16 sps:$4 sm:$0xff]   ;;  %v3496_v2 = vld [vmem:[%s4946_s5 + $0x244] ss:$16 sps:$4 sm:$0xff]  }
  0x34   :  { %251 = vmatpush1.bf16.msra.mxu0 %v139_v26  ;;  %268 = vmatprep.mubr.bf16.mxu0 %v3915_v3  ;;  %v3499_v5 = vld [vmem:[%s4946_s5 + $0x24] ss:$16 sps:$4 sm:$0xff]   ;;  %v3494_v6 = vld [vmem:[%s4946_s5 + $0x240] ss:$16 sps:$4 sm:$0xff]  }
  0x35   :  { %3027 = vmatprep.subr.msk.bf16.mxu0 %vm346_vm2, %v3020_v27  ;;  %294 = vmatpush1.bf16.msra.mxu1 %v145_v28  ;;  %v3502_v7 = vld [vmem:[%s4946_s5 + $0x224] ss:$16 sps:$4 sm:$0xff]   ;;  %v3497_v8 = vld [vmem:[%s4946_s5 + $0x20] ss:$16 sps:$4 sm:$0xff]  }
  0x36   :  { %311 = vmatprep.mubr.bf16.mxu1 %v3915_v3  ;;  %3029 = vmatprep.subr.msk.bf16.mxu1 %vm346_vm2, %v3022_v29  ;;  %v3505_v9 = vld [vmem:[%s4946_s5 + $0x4] ss:$16 sps:$4 sm:$0xff]   ;;  %v3500_v10 = vld [vmem:[%s4946_s5 + $0x220] ss:$16 sps:$4 sm:$0xff]  }
  0x37   :  { %v3508_v11 = vld [vmem:[%s4946_s5 + $0x204] ss:$16 sps:$4 sm:$0xff]   ;;  %v3503_v12 = vld [vmem:[%s4946_s5] ss:$16 sps:$4 sm:$0xff]  }
  0x38   :  { %v3511_v13 = vld [vmem:[%s4946_s5 + $0x1e4] ss:$16 sps:$4 sm:$0xff]   ;;  %v3506_v14 = vld [vmem:[%s4946_s5 + $0x200] ss:$16 sps:$4 sm:$0xff]  }
  0x39   :  { %v3509_v15 = vld [vmem:[%s4946_s5 + $0x1e0] ss:$16 sps:$4 sm:$0xff]   ;;  %v3514_v16 = vld [vmem:[%s4946_s5 + $0x3e4] ss:$16 sps:$4 sm:$0xff]  }
  0x3a   :  { %v3512_v17 = vld [vmem:[%s4946_s5 + $0x3e0] ss:$16 sps:$4 sm:$0xff]   ;;  %v3517_v18 = vld [vmem:[%s4946_s5 + $0x1c4] ss:$16 sps:$4 sm:$0xff]  }
  0x3b   :  { %3016 = vmatmul.mubr.msk.bf16.vlgmr.msra.gmra.mxu0 %vm121_vm1, %v78_v23  ;;  %3018 = vmatmul.mubr.msk.bf16.vlgmr.msra.gmra.mxu1 %vm121_vm1, %v78_v23  ;;  %v3515_v19 = vld [vmem:[%s4946_s5 + $0x1c0] ss:$16 sps:$4 sm:$0xff]   ;;  %v3520_v20 = vld [vmem:[%s4946_s5 + $0x3c4] ss:$16 sps:$4 sm:$0xff]  }
  0x3c   :  { %386 = vmatpush1.bf16.msra.mxu0 %v348_v34  ;;  %403 = vmatprep.mubr.bf16.mxu0 %v3915_v3  ;;  %v3518_v21 = vld [vmem:[%s4946_s5 + $0x3c0] ss:$16 sps:$4 sm:$0xff]   ;;  %v3523_v22 = vld [vmem:[%s4946_s5 + $0x1a4] ss:$16 sps:$4 sm:$0xff]  }
  0x3d   :  { %3031 = vmatprep.subr.msk.bf16.mxu0 %vm346_vm2, %v3024_v35  ;;  %429 = vmatpush1.bf16.msra.mxu1 %v354_v36  ;;  %v3521_v23 = vld [vmem:[%s4946_s5 + $0x1a0] ss:$16 sps:$4 sm:$0xff]   ;;  %v3526_v24 = vld [vmem:[%s4946_s5 + $0x3a4] ss:$16 sps:$4 sm:$0xff]  }
  0x3e   :  { %446 = vmatprep.mubr.bf16.mxu1 %v3915_v3  ;;  %3033 = vmatprep.subr.msk.bf16.mxu1 %vm346_vm2, %v3026_v38  ;;  %v3524_v25 = vld [vmem:[%s4946_s5 + $0x3a0] ss:$16 sps:$4 sm:$0xff]   ;;  %v3529_v26 = vld [vmem:[%s4946_s5 + $0x184] ss:$16 sps:$4 sm:$0xff]  }
  0x3f   :  { %v3527_v27 = vld [vmem:[%s4946_s5 + $0x180] ss:$16 sps:$4 sm:$0xff]   ;;  %v3532_v28 = vld [vmem:[%s4946_s5 + $0x384] ss:$16 sps:$4 sm:$0xff]  }
  0x40   :  { %v3530_v29 = vld [vmem:[%s4946_s5 + $0x380] ss:$16 sps:$4 sm:$0xff]   ;;  %v3535_v30 = vld [vmem:[%s4946_s5 + $0x164] ss:$16 sps:$4 sm:$0xff]  }
  0x41   :  { %v3533_v31 = vld [vmem:[%s4946_s5 + $0x160] ss:$16 sps:$4 sm:$0xff]   ;;  %v3538_v32 = vld [vmem:[%s4946_s5 + $0x364] ss:$16 sps:$4 sm:$0xff]  }
  0x42   :  { %v3536_v33 = vld [vmem:[%s4946_s5 + $0x360] ss:$16 sps:$4 sm:$0xff]   ;;  %v3541_v34 = vld [vmem:[%s4946_s5 + $0x144] ss:$16 sps:$4 sm:$0xff]  }
  0x43   :  { %3028 = vmatmul.mubr.msk.bf16.vlgmr.msra.gmra.mxu0 %vm342_vm3, %v75_v41  ;;  %3030 = vmatmul.mubr.msk.bf16.vlgmr.msra.gmra.mxu1 %vm342_vm3, %v75_v41  ;;  %v3539_v35 = vld [vmem:[%s4946_s5 + $0x140] ss:$16 sps:$4 sm:$0xff]   ;;  %v3544_v36 = vld [vmem:[%s4946_s5 + $0x344] ss:$16 sps:$4 sm:$0xff]  }
  0x44   :  { %472 = vmatpush1.bf16.msra.mxu0 %v360_v43  ;;  %489 = vmatprep.mubr.bf16.mxu0 %v3915_v3  ;;  %v3542_v37 = vld [vmem:[%s4946_s5 + $0x340] ss:$16 sps:$4 sm:$0xff]   ;;  %v3547_v38 = vld [vmem:[%s4946_s5 + $0x124] ss:$16 sps:$4 sm:$0xff]  }
  0x45   :  { %1415 = vmatprep.subr.bf16.mxu0 %v3463_v44  ;;  %515 = vmatpush1.bf16.msra.mxu1 %v366_v45  ;;  %v3545_v39 = vld [vmem:[%s4946_s5 + $0x120] ss:$16 sps:$4 sm:$0xff]   ;;  %v3550_v40 = vld [vmem:[%s4946_s5 + $0x324] ss:$16 sps:$4 sm:$0xff]  }
  0x46   :  { %532 = vmatprep.mubr.bf16.mxu1 %v3915_v3  ;;  %1458 = vmatprep.subr.bf16.mxu1 %v3466_v46  ;;  %v3491_v3 = vld [vmem:[%s4946_s5 + $0x40] ss:$16 sps:$4 sm:$0xff]   ;;  %v3553_v42 = vld [vmem:[%s4946_s5 + $0x104] ss:$16 sps:$4 sm:$0xff]   ;;  %v3559_v46 = vld [vmem:[%s4946_s5 + $0xec] ss:$16 sps:$4 sm:$0xff]  }
  0x47   :  { %v3551_v43 = vld [vmem:[%s4946_s5 + $0x100] ss:$16 sps:$4 sm:$0xff]   ;;  %v3556_v44 = vld [vmem:[%s4946_s5 + $0x304] ss:$16 sps:$4 sm:$0xff]  }
  0x48   :  { %v3554_v45 = vld [vmem:[%s4946_s5 + $0x300] ss:$16 sps:$4 sm:$0xff]  }
  0x4b   :  { %3032 = vmatmul.mubr.msk.bf16.vlgmr.msra.gmra.mxu0 %vm342_vm3, %v75_v41  ;;  %3034 = vmatmul.mubr.msk.bf16.vlgmr.msra.gmra.mxu1 %vm342_vm3, %v75_v41  ;;  %v3548_v41 = vld [vmem:[%s4946_s5 + $0x320] ss:$16 sps:$4 sm:$0xff]  }
  0x4c   :  { %1416 = vmatpush1.bf16.msra.mxu0 %v3461_v47  ;;  %1459 = vmatpush1.bf16.msra.mxu1 %v3464_v49  ;;  %v3562_v47 = vld [vmem:[%s4946_s5 + $0x2ec] ss:$16 sps:$4 sm:$0xff]  }
  0x4d   :  { %1417 = vmatprep.subr.bf16.mxu0 %v3469_v48  ;;  %1460 = vmatprep.subr.bf16.mxu1 %v3472_v50 }
  0x50   :  { %1418 = vmatpush1.bf16.msra.mxu0 %v3467_v51  ;;  %1461 = vmatpush1.bf16.msra.mxu1 %v3470_v53 }
  0x51   :  { %1419 = vmatprep.subr.bf16.mxu0 %v3475_v52  ;;  %1462 = vmatprep.subr.bf16.mxu1 %v3478_v54 }
  0x54   :  { %1420 = vmatpush1.bf16.msra.mxu0 %v3473_v55  ;;  %1463 = vmatpush1.bf16.msra.mxu1 %v3476_v57 }
  0x55   :  { %1421 = vmatprep.subr.bf16.mxu0 %v3481_v56  ;;  %1464 = vmatprep.subr.bf16.mxu1 %v3484_v58 }
  0x58   :  { %1422 = vmatpush1.bf16.msra.mxu0 %v3479_v59  ;;  %1465 = vmatpush1.bf16.msra.mxu1 %v3482_v61 }
  0x59   :  { %1423 = vmatprep.subr.bf16.mxu0 %v3487_v60  ;;  %1466 = vmatprep.subr.bf16.mxu1 %v3490_v62 }
  0x5c   :  { %1424 = vmatpush1.bf16.msra.mxu0 %v3485_v63  ;;  %1467 = vmatpush1.bf16.msra.mxu1 %v3488_v1  ;;  %v4252_v63 = vsub.s32 0, %v3982_v4  ;;  %v4255_v1 = vsub.s32 1, %v3982_v4 }
  0x5d   :  { %1425 = vmatprep.subr.bf16.mxu0 %v3493_v0  ;;  %1468 = vmatprep.subr.bf16.mxu1 %v3496_v2  ;;  %v543_v0 = vld [vmem:[#allocation2] sm:$0xff] }
  0x60   :  { %1426 = vmatpush1.bf16.msra.mxu0 %v3491_v3  ;;  %1469 = vmatpush1.bf16.msra.mxu1 %v3494_v6  ;;  %v4263_v6 = vsub.s32 3, %v3982_v4 }
  0x61   :  { %1427 = vmatprep.subr.bf16.mxu0 %v3499_v5  ;;  %1470 = vmatprep.subr.bf16.mxu1 %v3502_v7  ;;  %v4260_v5 = vsub.s32 2, %v3982_v4 }
  0x64   :  { %1428 = vmatpush1.bf16.msra.mxu0 %v3497_v8  ;;  %1471 = vmatpush1.bf16.msra.mxu1 %v3500_v10  ;;  %v548_v8 = vrot.slane %v543_v0, %v4252_v63 }
  0x65   :  { %1429 = vmatprep.subr.bf16.mxu0 %v3505_v9  ;;  %1472 = vmatprep.subr.bf16.mxu1 %v3508_v11 }
  0x68   :  { %1430 = vmatpush1.bf16.msra.mxu0 %v3503_v12  ;;  %1473 = vmatpush1.bf16.msra.mxu1 %v3506_v14  ;;  %v552_v12 = vrot.slane %v543_v0, %v4255_v1 }
  0x69   :  { %1431 = vmatprep.subr.bf16.mxu0 %v3511_v13  ;;  %1474 = vmatprep.subr.bf16.mxu1 %v3514_v16  ;;  %v563_v13 = vsub.s32 4, %v3982_v4 }
  0x6c   :  { %1432 = vmatpush2.bf16.msra.mxu0 %v3509_v15  ;;  %1475 = vmatpush2.bf16.msra.mxu1 %v3512_v17  ;;  %v556_v15 = vrot.slane %v543_v0, %v4260_v5 }
  0x6d   :  { %1433 = vmatprep.subr.bf16.mxu0 %v3517_v18  ;;  %1476 = vmatprep.subr.bf16.mxu1 %v3520_v20  ;;  %v560_v18 = vrot.slane %v543_v0, %v4263_v6 }
  0x70   :  { %1434 = vmatpush2.bf16.msra.mxu0 %v3515_v19  ;;  %1477 = vmatpush2.bf16.msra.mxu1 %v3518_v21  ;;  %v567_v19 = vsub.s32 5, %v3982_v4  ;;  %v571_v21 = vsub.s32 6, %v3982_v4 }
  0x71   :  { %1435 = vmatprep.subr.bf16.mxu0 %v3523_v22  ;;  %1478 = vmatprep.subr.bf16.mxu1 %v3526_v24 }
  0x74   :  { %1436 = vmatpush2.bf16.msra.mxu0 %v3521_v23  ;;  %1479 = vmatpush2.bf16.msra.mxu1 %v3524_v25 }
  0x75   :  { %1437 = vmatprep.subr.bf16.mxu0 %v3529_v26  ;;  %1480 = vmatprep.subr.bf16.mxu1 %v3532_v28  ;;  %v575_v26 = vsub.s32 7, %v3982_v4 }
  0x77   :  { %v576_v4 = vrot.slane %v543_v0, %v575_v26 }
  0x78   :  { %1438 = vmatpush2.bf16.msra.mxu0 %v3527_v27  ;;  %1481 = vmatpush2.bf16.msra.mxu1 %v3530_v29 }
  0x79   :  { %1439 = vmatprep.subr.bf16.mxu0 %v3535_v30  ;;  %1482 = vmatprep.subr.bf16.mxu1 %v3538_v32  ;;  %v564_v30 = vrot.slane %v543_v0, %v563_v13 }
  0x7c   :  { %1440 = vmatpush2.bf16.msra.mxu0 %v3533_v31  ;;  %1483 = vmatpush2.bf16.msra.mxu1 %v3536_v33 }
  0x7d   :  { %1441 = vmatprep.subr.bf16.mxu0 %v3541_v34  ;;  %1484 = vmatprep.subr.bf16.mxu1 %v3544_v36  ;;  %v568_v36 = vrot.slane %v543_v0, %v567_v19  ;;  %v3565_v19 = vld [vmem:[%s4946_s5 + $0xcc] ss:$16 sps:$4 sm:$0xff]  }
  0x80   :  { %1442 = vmatpush2.bf16.msra.mxu0 %v3539_v35  ;;  %1485 = vmatpush2.bf16.msra.mxu1 %v3542_v37 }
  0x81   :  { %1443 = vmatprep.subr.bf16.mxu0 %v3547_v38  ;;  %1486 = vmatprep.subr.bf16.mxu1 %v3550_v40  ;;  %v572_v40 = vrot.slane %v543_v0, %v571_v21 }
  0x84   :  { %1444 = vmatpush2.bf16.msra.mxu0 %v3545_v39  ;;  %1487 = vmatpush2.bf16.msra.mxu1 %v3548_v41 }
  0x85   :  { %1445 = vmatprep.subr.bf16.mxu0 %v3553_v42  ;;  %1488 = vmatprep.subr.bf16.mxu1 %v3556_v44 }
  0x88   :  { %1446 = vmatpush2.bf16.msra.mxu0 %v3551_v43  ;;  %1489 = vmatpush2.bf16.msra.mxu1 %v3554_v45 }
  0x89   :  { %1501 = vmatprep.subr.bf16.mxu0 %v3559_v46  ;;  %1544 = vmatprep.subr.bf16.mxu1 %v3562_v47 }
  0xf3   :  { %v184_v48 = vpop.f32.mrf.mxu0  ;;  %v227_v50 = vpop.f32.mrf.mxu1 }
  0xf5   :  { %v186_v49 = vpop.f32.mrf.mxu0  ;;  %v229_v52 = vpop.f32.mrf.mxu1 }
  0xf7   :  { %v188_v51 = vpop.f32.mrf.mxu0  ;;  %v231_v54 = vpop.f32.mrf.mxu1 }
  0xf9   :  { %v190_v53 = vpop.f32.mrf.mxu0  ;;  %v233_v55 = vpop.f32.mrf.mxu1 }
  0xfb   :  { %v270_v56 = vpop.f32.mrf.mxu0  ;;  %v313_v58 = vpop.f32.mrf.mxu1 }
  0xfd   :  { %v272_v57 = vpop.f32.mrf.mxu0  ;;  %v4245_v60 = vpop.f32.mrf.mxu1 }
  0xff   :  { %v4243_v59 = vpop.f32.mrf.mxu0  ;;  %v4249_v62 = vpop.f32.mrf.mxu1 }
 0x101   :  { %v4247_v61 = vpop.f32.mrf.mxu0  ;;  %v4257_v2 = vpop.f32.mrf.mxu1 }
 0x103   :  { %v405_v3 = vpop.f32.mrf.mxu0  ;;  %v448_v10 = vpop.f32.mrf.mxu1 }
 0x104   :  { %v406_v7 = vadd.f32 %v405_v3, %v184_v48  ;;  %v449_v14 = vadd.f32 %v448_v10, %v227_v50 }
 0x105   :  { %v407_v9 = vpop.f32.mrf.mxu0  ;;  %v450_v17 = vpop.f32.mrf.mxu1 }
 0x106   :  { %v408_v11 = vadd.f32 %v407_v9, %v186_v49  ;;  %v585_v22 = vadd.f32 %v548_v8, %v406_v7  ;;  %v451_v23 = vadd.f32 %v450_v17, %v229_v52  ;;  %v587_v31 = vadd.f32 %v556_v15, %v449_v14 }
 0x107   :  { %v409_v16 = vpop.f32.mrf.mxu0  ;;  %v452_v25 = vpop.f32.mrf.mxu1 }
 0x108   :  { %v410_v20 = vadd.f32 %v409_v16, %v188_v51  ;;  %v586_v27 = vadd.f32 %v552_v12, %v408_v11  ;;  %v588_v32 = vadd.f32 %v560_v18, %v451_v23  ;;  %v453_v33 = vadd.f32 %v452_v25, %v231_v54  ;;  %v3563_v25 = vld [vmem:[%s4946_s5 + $0xc8] ss:$16 sps:$4 sm:$0xff]  }
 0x109   :  { %v411_v24 = vpop.f32.mrf.mxu0  ;;  %v454_v34 = vpop.f32.mrf.mxu1  ;;  %v601_v41 = vmax.f32 %v585_v22, 0.0  ;;  %v603_v50 = vmax.f32 %v587_v31, 0.0 }
 0x10a   :  { %v593_v28 = vadd.f32 %v548_v8, %v410_v20  ;;  %v412_v29 = vadd.f32 %v411_v24, %v190_v53  ;;  %v455_v38 = vadd.f32 %v454_v34, %v233_v55  ;;  %v595_v43 = vadd.f32 %v556_v15, %v453_v33  ;;  %v3574_v33 = vld [vmem:[%s4946_s5 + $0x2ac] ss:$16 sps:$4 sm:$0xff]  }
 0x10b   :  { %v491_v35 = vpop.f32.mrf.mxu0  ;;  %v534_v45 = vpop.f32.mrf.mxu1  ;;  %v602_v46 = vmax.f32 %v586_v27, 0.0  ;;  %v604_v51 = vmax.f32 %v588_v32, 0.0 }
 0x10c   :  { %v594_v37 = vadd.f32 %v552_v12, %v412_v29  ;;  %v492_v39 = vadd.f32 %v491_v35, %v270_v56  ;;  %v609_v42 = vmax.f32 %v593_v28, 0.0  ;;  %v596_v48 = vadd.f32 %v560_v18, %v455_v38  ;;  %v3560_v18 = vld [vmem:[%s4946_s5 + $0x2e8] ss:$16 sps:$4 sm:$0xff]   ;;  %v3577_v38 = vld [vmem:[%s4946_s5 + $0x8c] ss:$16 sps:$4 sm:$0xff]  }
 0x10d   :  { %v493_v44 = vpop.f32.mrf.mxu0  ;;  %v535_v53 = vadd.f32 %v534_v45, %v313_v58  ;;  %v536_v3 = vpop.f32.mrf.mxu1  ;;  %v611_v7 = vmax.f32 %v595_v43, 0.0  ;;  %v3583_v43 = vld [vmem:[%s4946_s5 + $0x6c] ss:$16 sps:$4 sm:$0xff]  }
 0x10e   :  { %v610_v47 = vmax.f32 %v594_v37, 0.0  ;;  %v589_v49 = vadd.f32 %v564_v30, %v492_v39  ;;  %v494_v52 = vadd.f32 %v493_v44, %v272_v57  ;;  %v612_v55 = vmax.f32 %v596_v48, 0.0  ;;  %v3557_v57 = vld [vmem:[%s4946_s5 + $0xe8] ss:$16 sps:$4 sm:$0xff]   ;;  %v3586_v45 = vld [vmem:[%s4946_s5 + $0x26c] ss:$16 sps:$4 sm:$0xff]  }
 0x10f   :  { %v495_v54 = vpop.f32.mrf.mxu0  ;;  %v537_v8 = vadd.f32 %v536_v3, %v4245_v60  ;;  %v4275_v9 = vpack.c.bf16 %v609_v42, %v601_v41  ;;  %v591_v0 = vadd.f32 %v572_v40, %v535_v53  ;;  %v538_v12 = vpop.f32.mrf.mxu1  ;;  %v4288_v20 = vpack.c.bf16 %v611_v7, %v603_v50  ;;  %v3569_v37 = vld [vmem:[%s4946_s5 + $0xa8] ss:$16 sps:$4 sm:$0xff]   ;;  %v3580_v41 = vld [vmem:[%s4946_s5 + $0x28c] ss:$16 sps:$4 sm:$0xff]  }
 0x110   :  { %v496_v56 = vadd.f32 %v495_v54, %v4243_v59  ;;  %v590_v10 = vadd.f32 %v568_v36, %v494_v52  ;;  %v618_v13 = vpack.c.bf16 %v610_v47, %v602_v46  ;;  %v539_v16 = vadd.f32 %v538_v12, %v4249_v62  ;;  %v3572_v39 = vld [vmem:[%s4946_s5 + $0x2a8] ss:$16 sps:$4 sm:$0xff]   ;;  %v3589_v46 = vld [vmem:[%s4946_s5 + $0x4c] ss:$16 sps:$4 sm:$0xff]  }
 0x111   :  { %v497_v11 = vpop.f32.mrf.mxu0  ;;  %v592_v14 = vadd.f32 %v576_v4, %v537_v8  ;;  %v605_v59 = vmax.f32 %v589_v49, 0.0  ;;  %v540_v60 = vpop.f32.mrf.mxu1  ;;  %v620_v17 = vpack.c.bf16 %v612_v55, %v604_v51  ;;  %v607_v26 = vmax.f32 %v591_v0, 0.0  ;;  %v3575_v42 = vld [vmem:[%s4946_s5 + $0x88] ss:$16 sps:$4 sm:$0xff]   ;;  %v3592_v48 = vld [vmem:[%s4946_s5 + $0x24c] ss:$16 sps:$4 sm:$0xff]  }
 0x112   :  { %v597_v58 = vadd.f32 %v564_v30, %v496_v56  ;;  %v498_v15 = vadd.f32 %v497_v11, %v4247_v61  ;;  %1447 = vmatprep.mubr.bf16.mxu0 %v618_v13  ;;  %v599_v23 = vadd.f32 %v572_v40, %v539_v16  ;;  %v3568_v61 = vld [vmem:[%s4946_s5 + $0x2cc] ss:$16 sps:$4 sm:$0xff]   ;;  %v606_v62 = vmax.f32 %v590_v10, 0.0  ;;  %v3578_v44 = vld [vmem:[%s4946_s5 + $0x288] ss:$16 sps:$4 sm:$0xff]  }
 0x113   :  { %1448 = vmatmul.mubr.bf16.vlgmr.msra.gmra.mxu0 %v4275_v9  ;;  %v541_v24 = vadd.f32 %v540_v60, %v4257_v2  ;;  %1490 = vmatprep.mubr.bf16.mxu1 %v620_v17  ;;  %v3571_v30 = vld [vmem:[%s4946_s5 + $0xac] ss:$16 sps:$4 sm:$0xff]   ;;  %v3566_v2 = vld [vmem:[%s4946_s5 + $0x2c8] ss:$16 sps:$4 sm:$0xff]   ;;  %v608_v35 = vmax.f32 %v592_v14, 0.0 }
 0x114   :  { %v613_v21 = vmax.f32 %v597_v58, 0.0  ;;  %v598_v22 = vadd.f32 %v568_v36, %v498_v15  ;;  %1502 = vmatpush1.bf16.msra.mxu0 %v3557_v57  ;;  %v615_v29 = vmax.f32 %v599_v23, 0.0  ;;  %1533 = vmatprep.mubr.bf16.mxu0 %v618_v13  ;;  %v3584_v47 = vld [vmem:[%s4946_s5 + $0x268] ss:$16 sps:$4 sm:$0xff]   ;;  %v3595_v50 = vld [vmem:[%s4946_s5 + $0x2c] ss:$16 sps:$4 sm:$0xff]  }
 0x115   :  { %1491 = vmatmul.mubr.bf16.vlgmr.msra.gmra.mxu1 %v4288_v20  ;;  %v600_v31 = vadd.f32 %v576_v4, %v541_v24  ;;  %1503 = vmatprep.subr.bf16.mxu0 %v3565_v19  ;;  %v3581_v4 = vld [vmem:[%s4946_s5 + $0x68] ss:$16 sps:$4 sm:$0xff]   ;;  %v3598_v52 = vld [vmem:[%s4946_s5 + $0x22c] ss:$16 sps:$4 sm:$0xff]  }
 0x116   :  { %v4298_v27 = vpack.c.bf16 %v613_v21, %v605_v59  ;;  %v614_v28 = vmax.f32 %v598_v22, 0.0  ;;  %1545 = vmatpush1.bf16.msra.mxu1 %v3560_v18  ;;  %v4307_v32 = vpack.c.bf16 %v615_v29, %v607_v26  ;;  %1576 = vmatprep.mubr.bf16.mxu1 %v620_v17  ;;  %v3587_v49 = vld [vmem:[%s4946_s5 + $0x48] ss:$16 sps:$4 sm:$0xff]   ;;  %v3601_v54 = vld [vmem:[%s4946_s5 + $0xc] ss:$16 sps:$4 sm:$0xff]  }
 0x117   :  { %1546 = vmatprep.subr.bf16.mxu1 %v3568_v61  ;;  %v616_v36 = vmax.f32 %v600_v31, 0.0  ;;  %v3590_v51 = vld [vmem:[%s4946_s5 + $0x248] ss:$16 sps:$4 sm:$0xff]   ;;  %v3604_v7 = vld [vmem:[%s4946_s5 + $0x20c] ss:$16 sps:$4 sm:$0xff]  }
 0x118   :  { %v4312_v34 = vpack.c.bf16 %v614_v28, %v606_v62  ;;  %1504 = vmatpush1.bf16.msra.mxu0 %v3563_v25  ;;  %v3593_v53 = vld [vmem:[%s4946_s5 + $0x28] ss:$16 sps:$4 sm:$0xff]   ;;  %v3607_v56 = vld [vmem:[%s4946_s5 + $0x1ec] ss:$16 sps:$4 sm:$0xff]  }
 0x119   :  { %1505 = vmatprep.subr.bf16.mxu0 %v3571_v30  ;;  %v4323_v40 = vpack.c.bf16 %v616_v36, %v608_v35  ;;  %v3596_v3 = vld [vmem:[%s4946_s5 + $0x228] ss:$16 sps:$4 sm:$0xff]   ;;  %v3610_v10 = vld [vmem:[%s4946_s5 + $0x3ec] ss:$16 sps:$4 sm:$0xff]  }
 0x11a   :  { %1547 = vmatpush1.bf16.msra.mxu1 %v3566_v2  ;;  %v3599_v55 = vld [vmem:[%s4946_s5 + $0x8] ss:$16 sps:$4 sm:$0xff]   ;;  %v3613_v11 = vld [vmem:[%s4946_s5 + $0x1cc] ss:$16 sps:$4 sm:$0xff]  }
 0x11b   :  { %1548 = vmatprep.subr.bf16.mxu1 %v3574_v33  ;;  %v3602_v8 = vld [vmem:[%s4946_s5 + $0x208] ss:$16 sps:$4 sm:$0xff]   ;;  %v3616_v13 = vld [vmem:[%s4946_s5 + $0x3cc] ss:$16 sps:$4 sm:$0xff]  }
 0x11c   :  { %1506 = vmatpush1.bf16.msra.mxu0 %v3569_v37  ;;  %v3605_v0 = vld [vmem:[%s4946_s5 + $0x1e8] ss:$16 sps:$4 sm:$0xff]   ;;  %v3619_v58 = vld [vmem:[%s4946_s5 + $0x1ac] ss:$16 sps:$4 sm:$0xff]  }
 0x11d   :  { %1507 = vmatprep.subr.bf16.mxu0 %v3577_v38  ;;  %v3608_v12 = vld [vmem:[%s4946_s5 + $0x3e8] ss:$16 sps:$4 sm:$0xff]   ;;  %v3622_v15 = vld [vmem:[%s4946_s5 + $0x3ac] ss:$16 sps:$4 sm:$0xff]  }
 0x11e   :  { %1549 = vmatpush1.bf16.msra.mxu1 %v3572_v39  ;;  %v3611_v57 = vld [vmem:[%s4946_s5 + $0x1c8] ss:$16 sps:$4 sm:$0xff]   ;;  %v3625_v59 = vld [vmem:[%s4946_s5 + $0x18c] ss:$16 sps:$4 sm:$0xff]  }
 0x11f   :  { %1550 = vmatprep.subr.bf16.mxu1 %v3580_v41  ;;  %v3614_v14 = vld [vmem:[%s4946_s5 + $0x3c8] ss:$16 sps:$4 sm:$0xff]   ;;  %v3628_v17 = vld [vmem:[%s4946_s5 + $0x38c] ss:$16 sps:$4 sm:$0xff]  }
 0x120   :  { %1508 = vmatpush1.bf16.msra.mxu0 %v3575_v42  ;;  %v3617_v16 = vld [vmem:[%s4946_s5 + $0x1a8] ss:$16 sps:$4 sm:$0xff]   ;;  %v3631_v19 = vld [vmem:[%s4946_s5 + $0x16c] ss:$16 sps:$4 sm:$0xff]  }
 0x121   :  { %1509 = vmatprep.subr.bf16.mxu0 %v3583_v43  ;;  %v3620_v60 = vld [vmem:[%s4946_s5 + $0x3a8] ss:$16 sps:$4 sm:$0xff]   ;;  %v3634_v22 = vld [vmem:[%s4946_s5 + $0x36c] ss:$16 sps:$4 sm:$0xff]  }
 0x122   :  { %1551 = vmatpush1.bf16.msra.mxu1 %v3578_v44  ;;  %v3623_v18 = vld [vmem:[%s4946_s5 + $0x188] ss:$16 sps:$4 sm:$0xff]   ;;  %v3637_v61 = vld [vmem:[%s4946_s5 + $0x14c] ss:$16 sps:$4 sm:$0xff]  }
 0x123   :  { %1552 = vmatprep.subr.bf16.mxu1 %v3586_v45  ;;  %v3626_v21 = vld [vmem:[%s4946_s5 + $0x388] ss:$16 sps:$4 sm:$0xff]   ;;  %v3640_v24 = vld [vmem:[%s4946_s5 + $0x34c] ss:$16 sps:$4 sm:$0xff]  }
 0x124   :  { %1510 = vmatpush1.bf16.msra.mxu0 %v3581_v4  ;;  %v3629_v23 = vld [vmem:[%s4946_s5 + $0x168] ss:$16 sps:$4 sm:$0xff]   ;;  %v3643_v26 = vld [vmem:[%s4946_s5 + $0x12c] ss:$16 sps:$4 sm:$0xff]  }
 0x125   :  { %1511 = vmatprep.subr.bf16.mxu0 %v3589_v46  ;;  %v3632_v62 = vld [vmem:[%s4946_s5 + $0x368] ss:$16 sps:$4 sm:$0xff]   ;;  %v3646_v29 = vld [vmem:[%s4946_s5 + $0x32c] ss:$16 sps:$4 sm:$0xff]  }
 0x126   :  { %1553 = vmatpush1.bf16.msra.mxu1 %v3584_v47  ;;  %v3635_v25 = vld [vmem:[%s4946_s5 + $0x148] ss:$16 sps:$4 sm:$0xff]   ;;  %v3649_v31 = vld [vmem:[%s4946_s5 + $0x10c] ss:$16 sps:$4 sm:$0xff]  }
 0x127   :  { %1554 = vmatprep.subr.bf16.mxu1 %v3592_v48  ;;  %v3638_v28 = vld [vmem:[%s4946_s5 + $0x348] ss:$16 sps:$4 sm:$0xff]   ;;  %v3652_v33 = vld [vmem:[%s4946_s5 + $0x30c] ss:$16 sps:$4 sm:$0xff]  }
 0x128   :  { %1512 = vmatpush1.bf16.msra.mxu0 %v3587_v49  ;;  %v3641_v30 = vld [vmem:[%s4946_s5 + $0x128] ss:$16 sps:$4 sm:$0xff]   ;;  %v3655_v36 = vld [vmem:[#allocation4 + $0xe4] ss:$16 sps:$4 sm:$0xff]  }
 0x129   :  { %1513 = vmatprep.subr.bf16.mxu0 %v3595_v50  ;;  %v3644_v2 = vld [vmem:[%s4946_s5 + $0x328] ss:$16 sps:$4 sm:$0xff]   ;;  %v3658_v38 = vld [vmem:[#allocation4 + $0x2e4] ss:$16 sps:$4 sm:$0xff]  }
 0x12a   :  { %1555 = vmatpush1.bf16.msra.mxu1 %v3590_v51  ;;  %v3647_v35 = vld [vmem:[%s4946_s5 + $0x108] ss:$16 sps:$4 sm:$0xff]   ;;  %v3661_v41 = vld [vmem:[#allocation4 + $0xc4] ss:$16 sps:$4 sm:$0xff]  }
 0x12b   :  { %1556 = vmatprep.subr.bf16.mxu1 %v3598_v52  ;;  %v3650_v37 = vld [vmem:[%s4946_s5 + $0x308] ss:$16 sps:$4 sm:$0xff]   ;;  %v3664_v43 = vld [vmem:[#allocation4 + $0x2c4] ss:$16 sps:$4 sm:$0xff]  }
 0x12c   :  { %1514 = vmatpush1.bf16.msra.mxu0 %v3593_v53  ;;  %v3653_v39 = vld [vmem:[#allocation4 + $0xe0] ss:$16 sps:$4 sm:$0xff]   ;;  %v3667_v45 = vld [vmem:[#allocation4 + $0xa4] ss:$16 sps:$4 sm:$0xff]  }
 0x12d   :  { %1515 = vmatprep.subr.bf16.mxu0 %v3601_v54  ;;  %v3656_v42 = vld [vmem:[#allocation4 + $0x2e0] ss:$16 sps:$4 sm:$0xff]   ;;  %v3670_v46 = vld [vmem:[#allocation4 + $0x2a4] ss:$16 sps:$4 sm:$0xff]  }
 0x12e   :  { %1557 = vmatpush1.bf16.msra.mxu1 %v3596_v3  ;;  %v3659_v44 = vld [vmem:[#allocation4 + $0xc0] ss:$16 sps:$4 sm:$0xff]   ;;  %v3676_v49 = vld [vmem:[#allocation4 + $0x284] ss:$16 sps:$4 sm:$0xff]  }
 0x12f   :  { %1558 = vmatprep.subr.bf16.mxu1 %v3604_v7  ;;  %v3662_v4 = vld [vmem:[#allocation4 + $0x2c0] ss:$16 sps:$4 sm:$0xff]   ;;  %v3682_v52 = vld [vmem:[#allocation4 + $0x264] ss:$16 sps:$4 sm:$0xff]  }
 0x130   :  { %1516 = vmatpush1.bf16.msra.mxu0 %v3599_v55  ;;  %v3665_v47 = vld [vmem:[#allocation4 + $0xa0] ss:$16 sps:$4 sm:$0xff]   ;;  %v3685_v54 = vld [vmem:[#allocation4 + $0x44] ss:$16 sps:$4 sm:$0xff]  }
 0x131   :  { %1517 = vmatprep.subr.bf16.mxu0 %v3607_v56  ;;  %v3668_v48 = vld [vmem:[#allocation4 + $0x2a0] ss:$16 sps:$4 sm:$0xff]   ;;  %v3688_v7 = vld [vmem:[#allocation4 + $0x244] ss:$16 sps:$4 sm:$0xff]  }
 0x132   :  { %1559 = vmatpush1.bf16.msra.mxu1 %v3602_v8  ;;  %v3671_v50 = vld [vmem:[#allocation4 + $0x80] ss:$16 sps:$4 sm:$0xff]   ;;  %v3691_v56 = vld [vmem:[#allocation4 + $0x24] ss:$16 sps:$4 sm:$0xff]  }
 0x133   :  { %1560 = vmatprep.subr.bf16.mxu1 %v3610_v10  ;;  %v3674_v51 = vld [vmem:[#allocation4 + $0x280] ss:$16 sps:$4 sm:$0xff]   ;;  %v3694_v10 = vld [vmem:[#allocation4 + $0x224] ss:$16 sps:$4 sm:$0xff]  }
 0x134   :  { %1518 = vmatpush2.bf16.msra.mxu0 %v3605_v0  ;;  %v3677_v53 = vld [vmem:[#allocation4 + $0x60] ss:$16 sps:$4 sm:$0xff]  }
 0x135   :  { %1519 = vmatprep.subr.bf16.mxu0 %v3613_v11  ;;  %v3680_v3 = vld [vmem:[#allocation4 + $0x260] ss:$16 sps:$4 sm:$0xff]   ;;  %v3697_v11 = vld [vmem:[#allocation4 + $0x4] ss:$16 sps:$4 sm:$0xff]  }
 0x136   :  { %1561 = vmatpush2.bf16.msra.mxu1 %v3608_v12  ;;  %v3683_v55 = vld [vmem:[#allocation4 + $0x40] ss:$16 sps:$4 sm:$0xff]  }
 0x137   :  { %1562 = vmatprep.subr.bf16.mxu1 %v3616_v13  ;;  %v3686_v8 = vld [vmem:[#allocation4 + $0x240] ss:$16 sps:$4 sm:$0xff]   ;;  %v3700_v13 = vld [vmem:[#allocation4 + $0x204] ss:$16 sps:$4 sm:$0xff]  }
 0x138   :  { %1520 = vmatpush2.bf16.msra.mxu0 %v3611_v57  ;;  %v3689_v0 = vld [vmem:[#allocation4 + $0x20] ss:$16 sps:$4 sm:$0xff]  }
 0x139   :  { %1521 = vmatprep.subr.bf16.mxu0 %v3619_v58  ;;  %v3692_v12 = vld [vmem:[#allocation4 + $0x220] ss:$16 sps:$4 sm:$0xff]   ;;  %v3703_v58 = vld [vmem:[#allocation4 + $0x1e4] ss:$16 sps:$4 sm:$0xff]  }
 0x13a   :  { %1563 = vmatpush2.bf16.msra.mxu1 %v3614_v14  ;;  %v3695_v57 = vld [vmem:[#allocation4] ss:$16 sps:$4 sm:$0xff]  }
 0x13b   :  { %1564 = vmatprep.subr.bf16.mxu1 %v3622_v15  ;;  %v3698_v14 = vld [vmem:[#allocation4 + $0x200] ss:$16 sps:$4 sm:$0xff]   ;;  %v3706_v15 = vld [vmem:[#allocation4 + $0x3e4] ss:$16 sps:$4 sm:$0xff]  }
 0x13c   :  { %1522 = vmatpush2.bf16.msra.mxu0 %v3617_v16  ;;  %v3701_v16 = vld [vmem:[#allocation4 + $0x1e0] ss:$16 sps:$4 sm:$0xff]  }
 0x13d   :  { %1523 = vmatprep.subr.bf16.mxu0 %v3625_v59  ;;  %v3709_v59 = vld [vmem:[#allocation4 + $0x1c4] ss:$16 sps:$4 sm:$0xff]  }
 0x13e   :  { %1565 = vmatpush2.bf16.msra.mxu1 %v3620_v60  ;;  %v3704_v60 = vld [vmem:[#allocation4 + $0x3e0] ss:$16 sps:$4 sm:$0xff]  }
 0x13f   :  { %1566 = vmatprep.subr.bf16.mxu1 %v3628_v17  ;;  %v3712_v17 = vld [vmem:[#allocation4 + $0x3c4] ss:$16 sps:$4 sm:$0xff]  }
 0x140   :  { %1524 = vmatpush2.bf16.msra.mxu0 %v3623_v18  ;;  %v3707_v18 = vld [vmem:[#allocation4 + $0x1c0] ss:$16 sps:$4 sm:$0xff]  }
 0x141   :  { %1525 = vmatprep.subr.bf16.mxu0 %v3631_v19  ;;  %v3715_v19 = vld [vmem:[#allocation4 + $0x1a4] ss:$16 sps:$4 sm:$0xff]  }
 0x142   :  { %1567 = vmatpush2.bf16.msra.mxu1 %v3626_v21  ;;  %v3710_v21 = vld [vmem:[#allocation4 + $0x3c0] ss:$16 sps:$4 sm:$0xff]  }
 0x143   :  { %1568 = vmatprep.subr.bf16.mxu1 %v3634_v22  ;;  %v3718_v22 = vld [vmem:[#allocation4 + $0x3a4] ss:$16 sps:$4 sm:$0xff]  }
 0x144   :  { %1526 = vmatpush2.bf16.msra.mxu0 %v3629_v23  ;;  %v3713_v23 = vld [vmem:[#allocation4 + $0x1a0] ss:$16 sps:$4 sm:$0xff]  }
 0x145   :  { %1527 = vmatprep.subr.bf16.mxu0 %v3637_v61  ;;  %v3721_v61 = vld [vmem:[#allocation4 + $0x184] ss:$16 sps:$4 sm:$0xff]  }
 0x146   :  { %1569 = vmatpush2.bf16.msra.mxu1 %v3632_v62  ;;  %v3716_v62 = vld [vmem:[#allocation4 + $0x3a0] ss:$16 sps:$4 sm:$0xff]  }
 0x147   :  { %1570 = vmatprep.subr.bf16.mxu1 %v3640_v24  ;;  %v3724_v24 = vld [vmem:[#allocation4 + $0x384] ss:$16 sps:$4 sm:$0xff]  }
 0x148   :  { %1528 = vmatpush2.bf16.msra.mxu0 %v3635_v25  ;;  %v3719_v25 = vld [vmem:[#allocation4 + $0x180] ss:$16 sps:$4 sm:$0xff]  }
 0x149   :  { %1529 = vmatprep.subr.bf16.mxu0 %v3643_v26  ;;  %v3727_v26 = vld [vmem:[#allocation4 + $0x164] ss:$16 sps:$4 sm:$0xff]  }
 0x14a   :  { %1571 = vmatpush2.bf16.msra.mxu1 %v3638_v28  ;;  %v3722_v28 = vld [vmem:[#allocation4 + $0x380] ss:$16 sps:$4 sm:$0xff]  }
 0x14b   :  { %1572 = vmatprep.subr.bf16.mxu1 %v3646_v29  ;;  %v3730_v29 = vld [vmem:[#allocation4 + $0x364] ss:$16 sps:$4 sm:$0xff]  }
 0x14c   :  { %1530 = vmatpush2.bf16.msra.mxu0 %v3641_v30  ;;  %v3725_v30 = vld [vmem:[#allocation4 + $0x160] ss:$16 sps:$4 sm:$0xff]  }
 0x14d   :  { %1531 = vmatprep.subr.bf16.mxu0 %v3649_v31  ;;  %v3733_v31 = vld [vmem:[#allocation4 + $0x144] ss:$16 sps:$4 sm:$0xff]  }
 0x14e   :  { %1573 = vmatpush2.bf16.msra.mxu1 %v3644_v2  ;;  %v3728_v2 = vld [vmem:[#allocation4 + $0x360] ss:$16 sps:$4 sm:$0xff]  }
 0x14f   :  { %1574 = vmatprep.subr.bf16.mxu1 %v3652_v33  ;;  %v3736_v33 = vld [vmem:[#allocation4 + $0x344] ss:$16 sps:$4 sm:$0xff]  }
 0x150   :  { %1532 = vmatpush2.bf16.msra.mxu0 %v3647_v35  ;;  %v3731_v35 = vld [vmem:[#allocation4 + $0x140] ss:$16 sps:$4 sm:$0xff]  }
 0x151   :  { %2377 = vmatprep.subr.bf16.mxu0 %v3655_v36  ;;  %v3739_v36 = vld [vmem:[#allocation4 + $0x124] ss:$16 sps:$4 sm:$0xff]  }
 0x152   :  { %1575 = vmatpush2.bf16.msra.mxu1 %v3650_v37  ;;  %v3734_v37 = vld [vmem:[#allocation4 + $0x340] ss:$16 sps:$4 sm:$0xff]  }
 0x153   :  { %1534 = vmatmul.mubr.bf16.vlgmr.msra.gmra.mxu0 %v4275_v9  ;;  %2420 = vmatprep.subr.bf16.mxu1 %v3658_v38  ;;  %v3673_v9 = vld [vmem:[#allocation4 + $0x84] ss:$16 sps:$4 sm:$0xff]  }
 0x154   :  { %2378 = vmatpush1.bf16.msra.mxu0 %v3653_v39  ;;  %2409 = vmatprep.mubr.bf16.mxu0 %v4312_v34  ;;  %v3742_v38 = vld [vmem:[#allocation4 + $0x324] ss:$16 sps:$4 sm:$0xff]   ;;  %v3737_v39 = vld [vmem:[#allocation4 + $0x120] ss:$16 sps:$4 sm:$0xff]  }
 0x155   :  { %1577 = vmatmul.mubr.bf16.vlgmr.msra.gmra.mxu1 %v4288_v20  ;;  %2379 = vmatprep.subr.bf16.mxu0 %v3661_v41  ;;  %v3679_v20 = vld [vmem:[#allocation4 + $0x64] ss:$16 sps:$4 sm:$0xff]  }
 0x156   :  { %2421 = vmatpush1.bf16.msra.mxu1 %v3656_v42  ;;  %2452 = vmatprep.mubr.bf16.mxu1 %v4323_v40  ;;  %v3745_v41 = vld [vmem:[#allocation4 + $0x104] ss:$16 sps:$4 sm:$0xff]   ;;  %v3740_v42 = vld [vmem:[#allocation4 + $0x320] ss:$16 sps:$4 sm:$0xff]  }
 0x157   :  { %2422 = vmatprep.subr.bf16.mxu1 %v3664_v43  ;;  %v3748_v43 = vld [vmem:[#allocation4 + $0x304] ss:$16 sps:$4 sm:$0xff]  }
 0x158   :  { %2380 = vmatpush1.bf16.msra.mxu0 %v3659_v44  ;;  %v3743_v44 = vld [vmem:[#allocation4 + $0x100] ss:$16 sps:$4 sm:$0xff]  }
 0x159   :  { %2381 = vmatprep.subr.bf16.mxu0 %v3667_v45  ;;  %v3751_v45 = vld [vmem:[#allocation4 + $0xec] ss:$16 sps:$4 sm:$0xff]  }
 0x15a   :  { %2423 = vmatpush1.bf16.msra.mxu1 %v3662_v4  ;;  %v3746_v4 = vld [vmem:[#allocation4 + $0x300] ss:$16 sps:$4 sm:$0xff]  }
 0x15b   :  { %2424 = vmatprep.subr.bf16.mxu1 %v3670_v46  ;;  %v3754_v46 = vld [vmem:[#allocation4 + $0x2ec] ss:$16 sps:$4 sm:$0xff]  }
 0x15c   :  { %2382 = vmatpush1.bf16.msra.mxu0 %v3665_v47  ;;  %v3749_v47 = vld [vmem:[#allocation4 + $0xe8] ss:$16 sps:$4 sm:$0xff]  }
 0x15d   :  { %2383 = vmatprep.subr.bf16.mxu0 %v3673_v9  ;;  %v3757_v9 = vld [vmem:[#allocation4 + $0xcc] ss:$16 sps:$4 sm:$0xff]  }
 0x15e   :  { %2425 = vmatpush1.bf16.msra.mxu1 %v3668_v48  ;;  %v3752_v48 = vld [vmem:[#allocation4 + $0x2e8] ss:$16 sps:$4 sm:$0xff]  }
 0x15f   :  { %2426 = vmatprep.subr.bf16.mxu1 %v3676_v49  ;;  %v3760_v49 = vld [vmem:[#allocation4 + $0x2cc] ss:$16 sps:$4 sm:$0xff]  }
 0x160   :  { %2384 = vmatpush1.bf16.msra.mxu0 %v3671_v50  ;;  %v3755_v50 = vld [vmem:[#allocation4 + $0xc8] ss:$16 sps:$4 sm:$0xff]  }
 0x161   :  { %2385 = vmatprep.subr.bf16.mxu0 %v3679_v20  ;;  %v3763_v20 = vld [vmem:[#allocation4 + $0xac] ss:$16 sps:$4 sm:$0xff]  }
 0x162   :  { %2427 = vmatpush1.bf16.msra.mxu1 %v3674_v51  ;;  %v3758_v51 = vld [vmem:[#allocation4 + $0x2c8] ss:$16 sps:$4 sm:$0xff]  }
 0x163   :  { %2428 = vmatprep.subr.bf16.mxu1 %v3682_v52  ;;  %v3766_v52 = vld [vmem:[#allocation4 + $0x2ac] ss:$16 sps:$4 sm:$0xff]  }
 0x164   :  { %2386 = vmatpush1.bf16.msra.mxu0 %v3677_v53  ;;  %v3761_v53 = vld [vmem:[#allocation4 + $0xa8] ss:$16 sps:$4 sm:$0xff]  }
 0x165   :  { %2387 = vmatprep.subr.bf16.mxu0 %v3685_v54  ;;  %v3769_v54 = vld [vmem:[#allocation4 + $0x8c] ss:$16 sps:$4 sm:$0xff]  }
 0x166   :  { %2429 = vmatpush1.bf16.msra.mxu1 %v3680_v3  ;;  %v3764_v3 = vld [vmem:[#allocation4 + $0x2a8] ss:$16 sps:$4 sm:$0xff]  }
 0x167   :  { %2430 = vmatprep.subr.bf16.mxu1 %v3688_v7  ;;  %v3772_v7 = vld [vmem:[#allocation4 + $0x28c] ss:$16 sps:$4 sm:$0xff]  }
 0x168   :  { %2388 = vmatpush1.bf16.msra.mxu0 %v3683_v55  ;;  %v3775_v55 = vld [vmem:[#allocation4 + $0x6c] ss:$16 sps:$4 sm:$0xff]  }
 0x169   :  { %2389 = vmatprep.subr.bf16.mxu0 %v3691_v56  ;;  %v3770_v56 = vld [vmem:[#allocation4 + $0x288] ss:$16 sps:$4 sm:$0xff]  }
 0x16a   :  { %2431 = vmatpush1.bf16.msra.mxu1 %v3686_v8  ;;  %v3778_v8 = vld [vmem:[#allocation4 + $0x26c] ss:$16 sps:$4 sm:$0xff]  }
 0x16b   :  { %2432 = vmatprep.subr.bf16.mxu1 %v3694_v10  ;;  %v3781_v10 = vld [vmem:[#allocation4 + $0x4c] ss:$16 sps:$4 sm:$0xff]  }
 0x16c   :  { %2390 = vmatpush1.bf16.msra.mxu0 %v3689_v0  ;;  %v3776_v0 = vld [vmem:[#allocation4 + $0x268] ss:$16 sps:$4 sm:$0xff]  }
 0x16d   :  { %2391 = vmatprep.subr.bf16.mxu0 %v3697_v11  ;;  %v3784_v11 = vld [vmem:[#allocation4 + $0x24c] ss:$16 sps:$4 sm:$0xff]  }
 0x16e   :  { %2433 = vmatpush1.bf16.msra.mxu1 %v3692_v12  ;;  %v3779_v12 = vld [vmem:[#allocation4 + $0x48] ss:$16 sps:$4 sm:$0xff]  }
 0x16f   :  { %2434 = vmatprep.subr.bf16.mxu1 %v3700_v13  ;;  %v3787_v13 = vld [vmem:[#allocation4 + $0x2c] ss:$16 sps:$4 sm:$0xff]  }
 0x170   :  { %2392 = vmatpush1.bf16.msra.mxu0 %v3695_v57  ;;  %v3782_v57 = vld [vmem:[#allocation4 + $0x248] ss:$16 sps:$4 sm:$0xff]  }
 0x171   :  { %2393 = vmatprep.subr.bf16.mxu0 %v3703_v58  ;;  %v3790_v58 = vld [vmem:[#allocation4 + $0x22c] ss:$16 sps:$4 sm:$0xff]  }
 0x172   :  { %2435 = vmatpush1.bf16.msra.mxu1 %v3698_v14  ;;  %v3785_v14 = vld [vmem:[#allocation4 + $0x28] ss:$16 sps:$4 sm:$0xff]  }
 0x173   :  { %2436 = vmatprep.subr.bf16.mxu1 %v3706_v15  ;;  %v3793_v15 = vld [vmem:[#allocation4 + $0xc] ss:$16 sps:$4 sm:$0xff]  }
 0x174   :  { %2394 = vmatpush2.bf16.msra.mxu0 %v3701_v16  ;;  %v3788_v16 = vld [vmem:[#allocation4 + $0x228] ss:$16 sps:$4 sm:$0xff]  }
 0x175   :  { %2395 = vmatprep.subr.bf16.mxu0 %v3709_v59  ;;  %v3796_v59 = vld [vmem:[#allocation4 + $0x20c] ss:$16 sps:$4 sm:$0xff]  }
 0x176   :  { %2437 = vmatpush2.bf16.msra.mxu1 %v3704_v60  ;;  %v3791_v60 = vld [vmem:[#allocation4 + $0x8] ss:$16 sps:$4 sm:$0xff]  }
 0x177   :  { %2438 = vmatprep.subr.bf16.mxu1 %v3712_v17  ;;  %v3799_v17 = vld [vmem:[#allocation4 + $0x1ec] ss:$16 sps:$4 sm:$0xff]  }
 0x178   :  { %2396 = vmatpush2.bf16.msra.mxu0 %v3707_v18  ;;  %v3794_v18 = vld [vmem:[#allocation4 + $0x208] ss:$16 sps:$4 sm:$0xff]  }
 0x179   :  { %2397 = vmatprep.subr.bf16.mxu0 %v3715_v19  ;;  %v3802_v19 = vld [vmem:[#allocation4 + $0x3ec] ss:$16 sps:$4 sm:$0xff]  }
 0x17a   :  { %2439 = vmatpush2.bf16.msra.mxu1 %v3710_v21  ;;  %v3797_v21 = vld [vmem:[#allocation4 + $0x1e8] ss:$16 sps:$4 sm:$0xff]  }
 0x17b   :  { %2440 = vmatprep.subr.bf16.mxu1 %v3718_v22  ;;  %v3805_v22 = vld [vmem:[#allocation4 + $0x1cc] ss:$16 sps:$4 sm:$0xff]  }
 0x17c   :  { %2398 = vmatpush2.bf16.msra.mxu0 %v3713_v23  ;;  %v3800_v23 = vld [vmem:[#allocation4 + $0x3e8] ss:$16 sps:$4 sm:$0xff]  }
 0x17d   :  { %2399 = vmatprep.subr.bf16.mxu0 %v3721_v61  ;;  %v3808_v61 = vld [vmem:[#allocation4 + $0x3cc] ss:$16 sps:$4 sm:$0xff]  }
 0x17e   :  { %2441 = vmatpush2.bf16.msra.mxu1 %v3716_v62  ;;  %v3803_v62 = vld [vmem:[#allocation4 + $0x1c8] ss:$16 sps:$4 sm:$0xff]  }
 0x17f   :  { %2442 = vmatprep.subr.bf16.mxu1 %v3724_v24  ;;  %v3811_v24 = vld [vmem:[#allocation4 + $0x1ac] ss:$16 sps:$4 sm:$0xff]  }
 0x180   :  { %2400 = vmatpush2.bf16.msra.mxu0 %v3719_v25  ;;  %v3806_v25 = vld [vmem:[#allocation4 + $0x3c8] ss:$16 sps:$4 sm:$0xff]  }
 0x181   :  { %2401 = vmatprep.subr.bf16.mxu0 %v3727_v26  ;;  %v3814_v26 = vld [vmem:[#allocation4 + $0x3ac] ss:$16 sps:$4 sm:$0xff]  }
 0x182   :  { %2443 = vmatpush2.bf16.msra.mxu1 %v3722_v28  ;;  %v3809_v28 = vld [vmem:[#allocation4 + $0x1a8] ss:$16 sps:$4 sm:$0xff]  }
 0x183   :  { %2444 = vmatprep.subr.bf16.mxu1 %v3730_v29  ;;  %v3817_v29 = vld [vmem:[#allocation4 + $0x18c] ss:$16 sps:$4 sm:$0xff]  }
 0x184   :  { %2402 = vmatpush2.bf16.msra.mxu0 %v3725_v30  ;;  %v3812_v30 = vld [vmem:[#allocation4 + $0x3a8] ss:$16 sps:$4 sm:$0xff]  }
 0x185   :  { %2403 = vmatprep.subr.bf16.mxu0 %v3733_v31  ;;  %v3820_v31 = vld [vmem:[#allocation4 + $0x38c] ss:$16 sps:$4 sm:$0xff]  }
 0x186   :  { %2445 = vmatpush2.bf16.msra.mxu1 %v3728_v2  ;;  %v3815_v2 = vld [vmem:[#allocation4 + $0x188] ss:$16 sps:$4 sm:$0xff]  }
 0x187   :  { %2446 = vmatprep.subr.bf16.mxu1 %v3736_v33  ;;  %v3823_v33 = vld [vmem:[#allocation4 + $0x16c] ss:$16 sps:$4 sm:$0xff]  }
 0x188   :  { %2404 = vmatpush2.bf16.msra.mxu0 %v3731_v35  ;;  %v3818_v35 = vld [vmem:[#allocation4 + $0x388] ss:$16 sps:$4 sm:$0xff]  }
 0x189   :  { %2405 = vmatprep.subr.bf16.mxu0 %v3739_v36  ;;  %v3826_v36 = vld [vmem:[#allocation4 + $0x36c] ss:$16 sps:$4 sm:$0xff]  }
 0x18a   :  { %2447 = vmatpush2.bf16.msra.mxu1 %v3734_v37  ;;  %v3821_v37 = vld [vmem:[#allocation4 + $0x168] ss:$16 sps:$4 sm:$0xff]  }
 0x18b   :  { %2448 = vmatprep.subr.bf16.mxu1 %v3742_v38  ;;  %v3829_v38 = vld [vmem:[#allocation4 + $0x14c] ss:$16 sps:$4 sm:$0xff]  }
 0x18c   :  { %2406 = vmatpush2.bf16.msra.mxu0 %v3737_v39  ;;  %v3824_v39 = vld [vmem:[#allocation4 + $0x368] ss:$16 sps:$4 sm:$0xff]  }
 0x18d   :  { %2407 = vmatprep.subr.bf16.mxu0 %v3745_v41  ;;  %v3832_v41 = vld [vmem:[#allocation4 + $0x34c] ss:$16 sps:$4 sm:$0xff]  }
 0x18e   :  { %2449 = vmatpush2.bf16.msra.mxu1 %v3740_v42  ;;  %v3827_v42 = vld [vmem:[#allocation4 + $0x148] ss:$16 sps:$4 sm:$0xff]  }
 0x18f   :  { %2450 = vmatprep.subr.bf16.mxu1 %v3748_v43  ;;  %v3835_v43 = vld [vmem:[#allocation4 + $0x12c] ss:$16 sps:$4 sm:$0xff]  }
 0x190   :  { %2408 = vmatpush2.bf16.msra.mxu0 %v3743_v44  ;;  %v3830_v44 = vld [vmem:[#allocation4 + $0x348] ss:$16 sps:$4 sm:$0xff]  }
 0x191   :  { %2463 = vmatprep.subr.bf16.mxu0 %v3751_v45  ;;  %v3838_v45 = vld [vmem:[#allocation4 + $0x32c] ss:$16 sps:$4 sm:$0xff]  }
 0x192   :  { %2451 = vmatpush2.bf16.msra.mxu1 %v3746_v4  ;;  %v3833_v4 = vld [vmem:[#allocation4 + $0x128] ss:$16 sps:$4 sm:$0xff]  }
 0x193   :  { %2410 = vmatmul.mubr.bf16.vlgmr.msra.gmra.mxu0 %v4298_v27  ;;  %2506 = vmatprep.subr.bf16.mxu1 %v3754_v46  ;;  %v3841_v46 = vld [vmem:[#allocation4 + $0x10c] ss:$16 sps:$4 sm:$0xff]  }
 0x194   :  { %2464 = vmatpush1.bf16.msra.mxu0 %v3749_v47  ;;  %2495 = vmatprep.mubr.bf16.mxu0 %v4312_v34  ;;  %v3767_v34 = vld [vmem:[#allocation4 + $0x88] ss:$16 sps:$4 sm:$0xff]  }
 0x195   :  { %2453 = vmatmul.mubr.bf16.vlgmr.msra.gmra.mxu1 %v4307_v32  ;;  %2465 = vmatprep.subr.bf16.mxu0 %v3757_v9  ;;  %v3836_v47 = vld [vmem:[#allocation4 + $0x328] ss:$16 sps:$4 sm:$0xff]   ;;  %v3844_v9 = vld [vmem:[#allocation4 + $0x30c] ss:$16 sps:$4 sm:$0xff]  }
 0x196   :  { %2507 = vmatpush1.bf16.msra.mxu1 %v3752_v48  ;;  %2538 = vmatprep.mubr.bf16.mxu1 %v4323_v40  ;;  %v3773_v40 = vld [vmem:[#allocation4 + $0x68] ss:$16 sps:$4 sm:$0xff]  }
 0x197   :  { %2508 = vmatprep.subr.bf16.mxu1 %v3760_v49  ;;  %v3839_v48 = vld [vmem:[#allocation4 + $0x108] ss:$16 sps:$4 sm:$0xff]  }
 0x198   :  { %2466 = vmatpush1.bf16.msra.mxu0 %v3755_v50  ;;  %v3842_v49 = vld [vmem:[#allocation4 + $0x308] ss:$16 sps:$4 sm:$0xff]   ;;  %v2660_v50 = vld [vmem:[%s4949_s8 + $0x2f8] sm:$0xff] }
 0x199   :  { %2467 = vmatprep.subr.bf16.mxu0 %v3763_v20  ;;  %v2644_v20 = vld [vmem:[%s4949_s8 + $0x278] sm:$0xff] }
 0x19a   :  { %2509 = vmatpush1.bf16.msra.mxu1 %v3758_v51  ;;  %v2659_v51 = vld [vmem:[%s4949_s8 + $0x2f0] sm:$0xff] }
 0x19b   :  { %2510 = vmatprep.subr.bf16.mxu1 %v3766_v52  ;;  %v2643_v52 = vld [vmem:[%s4949_s8 + $0x270] sm:$0xff] }
 0x19c   :  { %2468 = vmatpush1.bf16.msra.mxu0 %v3761_v53  ;;  %v2658_v53 = vld [vmem:[%s4949_s8 + $0x2e8] sm:$0xff] }
 0x19d   :  { %2469 = vmatprep.subr.bf16.mxu0 %v3769_v54  ;;  %v2642_v54 = vld [vmem:[%s4949_s8 + $0x268] sm:$0xff] }
 0x19e   :  { %2511 = vmatpush1.bf16.msra.mxu1 %v3764_v3  ;;  %v2641_v3 = vld [vmem:[%s4949_s8 + $0x260] sm:$0xff] }
 0x19f   :  { %2512 = vmatprep.subr.bf16.mxu1 %v3772_v7  ;;  %v2640_v7 = vld [vmem:[%s4949_s8 + $0x258] sm:$0xff] }
 0x1a0   :  { %2470 = vmatpush1.bf16.msra.mxu0 %v3767_v34  ;;  %v2655_v34 = vld [vmem:[%s4949_s8 + $0x2d0] sm:$0xff] }
 0x1a1   :  { %2471 = vmatprep.subr.bf16.mxu0 %v3775_v55  ;;  %v2639_v55 = vld [vmem:[%s4949_s8 + $0x250] sm:$0xff] }
 0x1a2   :  { %2513 = vmatpush1.bf16.msra.mxu1 %v3770_v56  ;;  %v2654_v56 = vld [vmem:[%s4949_s8 + $0x2c8] sm:$0xff] }
 0x1a3   :  { %2514 = vmatprep.subr.bf16.mxu1 %v3778_v8  ;;  %v2638_v8 = vld [vmem:[%s4949_s8 + $0x248] sm:$0xff] }
 0x1a4   :  { %2472 = vmatpush1.bf16.msra.mxu0 %v3773_v40  ;;  %v2653_v40 = vld [vmem:[%s4949_s8 + $0x2c0] sm:$0xff] }
 0x1a5   :  { %2473 = vmatprep.subr.bf16.mxu0 %v3781_v10  ;;  %v2637_v10 = vld [vmem:[%s4949_s8 + $0x240] sm:$0xff] }
 0x1a6   :  { %2515 = vmatpush1.bf16.msra.mxu1 %v3776_v0  ;;  %v2652_v0 = vld [vmem:[%s4949_s8 + $0x2b8] sm:$0xff] }
 0x1a7   :  { %2516 = vmatprep.subr.bf16.mxu1 %v3784_v11  ;;  %v2636_v11 = vld [vmem:[%s4949_s8 + $0x238] sm:$0xff] }
 0x1a8   :  { %2474 = vmatpush1.bf16.msra.mxu0 %v3779_v12  ;;  %v2651_v12 = vld [vmem:[%s4949_s8 + $0x2b0] sm:$0xff] }
 0x1a9   :  { %2475 = vmatprep.subr.bf16.mxu0 %v3787_v13  ;;  %v2635_v13 = vld [vmem:[%s4949_s8 + $0x230] sm:$0xff] }
 0x1aa   :  { %2517 = vmatpush1.bf16.msra.mxu1 %v3782_v57  ;;  %v2650_v57 = vld [vmem:[%s4949_s8 + $0x2a8] sm:$0xff] }
 0x1ab   :  { %2518 = vmatprep.subr.bf16.mxu1 %v3790_v58  ;;  %v2634_v58 = vld [vmem:[%s4949_s8 + $0x228] sm:$0xff] }
 0x1ac   :  { %2476 = vmatpush1.bf16.msra.mxu0 %v3785_v14  ;;  %v2649_v14 = vld [vmem:[%s4949_s8 + $0x2a0] sm:$0xff] }
 0x1ad   :  { %2477 = vmatprep.subr.bf16.mxu0 %v3793_v15  ;;  %v2633_v15 = vld [vmem:[%s4949_s8 + $0x220] sm:$0xff] }
 0x1ae   :  { %2519 = vmatpush1.bf16.msra.mxu1 %v3788_v16  ;;  %v2648_v16 = vld [vmem:[%s4949_s8 + $0x298] sm:$0xff] }
 0x1af   :  { %2520 = vmatprep.subr.bf16.mxu1 %v3796_v59  ;;  %v2632_v59 = vld [vmem:[%s4949_s8 + $0x218] sm:$0xff] }
 0x1b0   :  { %2478 = vmatpush1.bf16.msra.mxu0 %v3791_v60  ;;  %v2647_v60 = vld [vmem:[%s4949_s8 + $0x290] sm:$0xff] }
 0x1b1   :  { %2479 = vmatprep.subr.bf16.mxu0 %v3799_v17  ;;  %v2631_v17 = vld [vmem:[%s4949_s8 + $0x210] sm:$0xff] }
 0x1b2   :  { %2521 = vmatpush1.bf16.msra.mxu1 %v3794_v18  ;;  %v2646_v18 = vld [vmem:[%s4949_s8 + $0x288] sm:$0xff] }
 0x1b3   :  { %2522 = vmatprep.subr.bf16.mxu1 %v3802_v19  ;;  %v2630_v19 = vld [vmem:[%s4949_s8 + $0x208] sm:$0xff] }
 0x1b4   :  { %2480 = vmatpush2.bf16.msra.mxu0 %v3797_v21  ;;  %v2645_v21 = vld [vmem:[%s4949_s8 + $0x280] sm:$0xff] }
 0x1b5   :  { %2481 = vmatprep.subr.bf16.mxu0 %v3805_v22  ;;  %v2629_v22 = vld [vmem:[%s4949_s8 + $0x200] sm:$0xff] }
 0x1b6   :  { %2523 = vmatpush2.bf16.msra.mxu1 %v3800_v23  ;;  %v2596_v23 = vld [vmem:[%s4949_s8 + $0xf8] sm:$0xff] }
 0x1b7   :  { %2524 = vmatprep.subr.bf16.mxu1 %v3808_v61  ;;  %v2692_v61 = vld [vmem:[%s4949_s8 + $0x3f8] sm:$0xff] }
 0x1b8   :  { %2482 = vmatpush2.bf16.msra.mxu0 %v3803_v62  ;;  %v2676_v62 = vld [vmem:[%s4949_s8 + $0x378] sm:$0xff] }
 0x1b9   :  { %2483 = vmatprep.subr.bf16.mxu0 %v3811_v24  ;;  %v2691_v24 = vld [vmem:[%s4949_s8 + $0x3f0] sm:$0xff] }
 0x1ba   :  { %2525 = vmatpush2.bf16.msra.mxu1 %v3806_v25  ;;  %v2675_v25 = vld [vmem:[%s4949_s8 + $0x370] sm:$0xff] }
 0x1bb   :  { %2526 = vmatprep.subr.bf16.mxu1 %v3814_v26  ;;  %v2690_v26 = vld [vmem:[%s4949_s8 + $0x3e8] sm:$0xff] }
 0x1bc   :  { %2484 = vmatpush2.bf16.msra.mxu0 %v3809_v28  ;;  %v2674_v28 = vld [vmem:[%s4949_s8 + $0x368] sm:$0xff] }
 0x1bd   :  { %2485 = vmatprep.subr.bf16.mxu0 %v3817_v29  ;;  %v2689_v29 = vld [vmem:[%s4949_s8 + $0x3e0] sm:$0xff] }
 0x1be   :  { %2527 = vmatpush2.bf16.msra.mxu1 %v3812_v30  ;;  %v2673_v30 = vld [vmem:[%s4949_s8 + $0x360] sm:$0xff] }
 0x1bf   :  { %2528 = vmatprep.subr.bf16.mxu1 %v3820_v31  ;;  %v2688_v31 = vld [vmem:[%s4949_s8 + $0x3d8] sm:$0xff] }
 0x1c0   :  { %2486 = vmatpush2.bf16.msra.mxu0 %v3815_v2  ;;  %v2672_v2 = vld [vmem:[%s4949_s8 + $0x358] sm:$0xff] }
 0x1c1   :  { %2487 = vmatprep.subr.bf16.mxu0 %v3823_v33  ;;  %v2687_v33 = vld [vmem:[%s4949_s8 + $0x3d0] sm:$0xff] }
 0x1c2   :  { %2529 = vmatpush2.bf16.msra.mxu1 %v3818_v35 }
 0x1c3   :  { %2530 = vmatprep.subr.bf16.mxu1 %v3826_v36  ;;  %v2671_v36 = vld [vmem:[%s4949_s8 + $0x350] sm:$0xff] }
 0x1c4   :  { %2488 = vmatpush2.bf16.msra.mxu0 %v3821_v37  ;;  %v2686_v37 = vld [vmem:[%s4949_s8 + $0x3c8] sm:$0xff] }
 0x1c5   :  { %2489 = vmatprep.subr.bf16.mxu0 %v3829_v38 }
 0x1c6   :  { %2531 = vmatpush2.bf16.msra.mxu1 %v3824_v39  ;;  %v2670_v39 = vld [vmem:[%s4949_s8 + $0x348] sm:$0xff] }
 0x1c7   :  { %2532 = vmatprep.subr.bf16.mxu1 %v3832_v41  ;;  %v2685_v41 = vld [vmem:[%s4949_s8 + $0x3c0] sm:$0xff] }
 0x1c8   :  { %2490 = vmatpush2.bf16.msra.mxu0 %v3827_v42 }
 0x1c9   :  { %2491 = vmatprep.subr.bf16.mxu0 %v3835_v43  ;;  %v2669_v43 = vld [vmem:[%s4949_s8 + $0x340] sm:$0xff] }
 0x1ca   :  { %2533 = vmatpush2.bf16.msra.mxu1 %v3830_v44  ;;  %v2684_v44 = vld [vmem:[%s4949_s8 + $0x3b8] sm:$0xff] }
 0x1cb   :  { %2534 = vmatprep.subr.bf16.mxu1 %v3838_v45 }
 0x1cc   :  { %2492 = vmatpush2.bf16.msra.mxu0 %v3833_v4  ;;  %v2668_v4 = vld [vmem:[%s4949_s8 + $0x338] sm:$0xff] }
 0x1cd   :  { %2493 = vmatprep.subr.bf16.mxu0 %v3841_v46  ;;  %v2683_v46 = vld [vmem:[%s4949_s8 + $0x3b0] sm:$0xff] }
 0x1ce   :  { %2535 = vmatpush2.bf16.msra.mxu1 %v3836_v47 }
 0x1cf   :  { %2536 = vmatprep.subr.bf16.mxu1 %v3844_v9  ;;  %v2667_v9 = vld [vmem:[%s4949_s8 + $0x330] sm:$0xff] }
 0x1d0   :  { %2494 = vmatpush2.bf16.msra.mxu0 %v3839_v48  ;;  %v2682_v48 = vld [vmem:[%s4949_s8 + $0x3a8] sm:$0xff] }
 0x1d1   :  { %3292 = vmatprep.subr.mxu0 %v2660_v50 }
 0x1d2   :  { %2537 = vmatpush2.bf16.msra.mxu1 %v3842_v49  ;;  %v4660_v49 = vld [vmem:[#allocation6] sm:$0xf] }
 0x1d3   :  { %2496 = vmatmul.mubr.bf16.vlgmr.msra.gmra.mxu0 %v4298_v27  ;;  %v2657_v27 = vld [vmem:[%s4949_s8 + $0x2e0] sm:$0xff]  ;;  %3330 = vmatprep.subr.mxu1 %v2692_v61  ;;  %v4620_v35 = vpop.f32.mrf.mxu0  ;;  %v4716_v61 = vld [vmem:[#allocation6 + $0x4] sm:$0xf] }
 0x1d4   :  { %3293 = vmatpush3.msra.mxu0 %v2644_v20  ;;  %v2666_v20 = vld [vmem:[%s4949_s8 + $0x328] sm:$0xff] }
 0x1d5   :  { %2539 = vmatmul.mubr.bf16.vlgmr.msra.gmra.mxu1 %v4307_v32  ;;  %3294 = vmatprep.subr.mxu0 %v2659_v51  ;;  %v2656_v32 = vld [vmem:[%s4949_s8 + $0x2d8] sm:$0xff]  ;;  %v4628_v38 = vpop.f32.mrf.mxu1  ;;  %v4636_v42 = vpop.f32.mrf.mxu0  ;;  %v766_v51 = vrot.slane %v4660_v49, %v4260_v5 }
 0x1d6   :  { %3295 = vmatpush3.msra.mxu0 %v2643_v52  ;;  %3331 = vmatpush3.msra.mxu1 %v2676_v62  ;;  %v2681_v52 = vld [vmem:[%s4949_s8 + $0x3a0] sm:$0xff]  ;;  %v1720_v62 = vrot.slane %v4716_v61, %v4252_v63 }
 0x1d7   :  { %3296 = vmatprep.subr.mxu0 %v2658_v53  ;;  %3332 = vmatprep.subr.mxu1 %v2691_v24  ;;  %v4644_v45 = vpop.f32.mrf.mxu1  ;;  %v4652_v47 = vpop.f32.mrf.mxu0  ;;  %v1724_v24 = vrot.slane %v4716_v61, %v4255_v1 }
 0x1d8   :  { %3297 = vmatpush3.msra.mxu0 %v2642_v54  ;;  %3333 = vmatpush3.msra.mxu1 %v2675_v25  ;;  %v770_v54 = vrot.slane %v4660_v49, %v4263_v6 }
 0x1d9   :  { %3298 = vmatprep.subr.mxu0 %v2657_v27  ;;  %3334 = vmatprep.subr.mxu1 %v2690_v26  ;;  %v4662_v50 = vpop.f32.mrf.mxu1  ;;  %v4672_v53 = vpop.f32.mrf.mxu0  ;;  %v4724_v26 = vrot.slane %v4660_v49, %v4255_v1 }
 0x1da   :  { %3299 = vmatpush3.msra.mxu0 %v2641_v3  ;;  %3335 = vmatpush3.msra.mxu1 %v2674_v28 }
 0x1db   :  { %3300 = vmatprep.subr.mxu0 %v2656_v32  ;;  %3336 = vmatprep.subr.mxu1 %v2689_v29  ;;  %v4676_v27 = vpop.f32.mrf.mxu1  ;;  %v2665_v32 = vld [vmem:[%s4949_s8 + $0x320] sm:$0xff] }
 0x1dc   :  { %3301 = vmatpush3.msra.mxu0 %v2640_v7  ;;  %3337 = vmatpush3.msra.mxu1 %v2673_v30 }
 0x1dd   :  { %3302 = vmatprep.subr.mxu0 %v2655_v34  ;;  %3338 = vmatprep.subr.mxu1 %v2688_v31  ;;  %v2680_v34 = vld [vmem:[%s4949_s8 + $0x398] sm:$0xff] }
 0x1de   :  { %3303 = vmatpush3.msra.mxu0 %v2639_v55  ;;  %3339 = vmatpush3.msra.mxu1 %v2672_v2 }
 0x1df   :  { %3304 = vmatprep.subr.mxu0 %v2654_v56  ;;  %3340 = vmatprep.subr.mxu1 %v2687_v33 }
 0x1e0   :  { %3305 = vmatpush3.msra.mxu0 %v2638_v8  ;;  %3341 = vmatpush3.msra.mxu1 %v2671_v36  ;;  %v2664_v8 = vld [vmem:[%s4949_s8 + $0x318] sm:$0xff] }
 0x1e1   :  { %3306 = vmatprep.subr.mxu0 %v2653_v40  ;;  %3342 = vmatprep.subr.mxu1 %v2686_v37  ;;  %v1452_v37 = vadd.f32 %v4636_v42, %v4724_v26  ;;  %v2595_v42 = vld [vmem:[%s4949_s8 + $0xf0] sm:$0xff] }
 0x1e2   :  { %3307 = vmatpush3.msra.mxu0 %v2637_v10  ;;  %3343 = vmatpush3.msra.mxu1 %v2670_v39 }
 0x1e3   :  { %3308 = vmatprep.subr.mxu0 %v2652_v0  ;;  %3344 = vmatprep.subr.mxu1 %v2685_v41  ;;  %v2679_v0 = vld [vmem:[%s4949_s8 + $0x390] sm:$0xff] }
 0x1e4   :  { %3309 = vmatpush3.msra.mxu0 %v2636_v11  ;;  %3345 = vmatpush3.msra.mxu1 %v2669_v43 }
 0x1e5   :  { %3310 = vmatprep.subr.mxu0 %v2651_v12  ;;  %3346 = vmatprep.subr.mxu1 %v2684_v44 }
 0x1e6   :  { %3311 = vmatpush3.msra.mxu0 %v2635_v13  ;;  %3347 = vmatpush3.msra.mxu1 %v2668_v4  ;;  %v2663_v13 = vld [vmem:[%s4949_s8 + $0x310] sm:$0xff] }
 0x1e7   :  { %3312 = vmatprep.subr.mxu0 %v2650_v57  ;;  %3348 = vmatprep.subr.mxu1 %v2683_v46 }
 0x1e8   :  { %3313 = vmatpush3.msra.mxu0 %v2634_v58  ;;  %3349 = vmatpush3.msra.mxu1 %v2667_v9 }
 0x1e9   :  { %3314 = vmatprep.subr.mxu0 %v2649_v14  ;;  %3350 = vmatprep.subr.mxu1 %v2682_v48  ;;  %v2678_v14 = vld [vmem:[%s4949_s8 + $0x388] sm:$0xff] }
 0x1ea   :  { %3315 = vmatpush3.msra.mxu0 %v2633_v15  ;;  %3351 = vmatpush3.msra.mxu1 %v2666_v20  ;;  %v2580_v20 = vld [vmem:[%s4949_s8 + $0x78] sm:$0xff] }
 0x1eb   :  { %3316 = vmatprep.subr.mxu0 %v2648_v16  ;;  %3352 = vmatprep.subr.mxu1 %v2681_v52 }
 0x1ec   :  { %3317 = vmatpush3.msra.mxu0 %v2632_v59  ;;  %3353 = vmatpush3.msra.mxu1 %v2665_v32  ;;  %v2662_v59 = vld [vmem:[%s4949_s8 + $0x308] sm:$0xff] }
 0x1ed   :  { %3318 = vmatprep.subr.mxu0 %v2647_v60  ;;  %3354 = vmatprep.subr.mxu1 %v2680_v34  ;;  %v2594_v32 = vld [vmem:[%s4949_s8 + $0xe8] sm:$0xff] }
 0x1ee   :  { %3319 = vmatpush3.msra.mxu0 %v2631_v17  ;;  %3355 = vmatpush3.msra.mxu1 %v2664_v8  ;;  %v2592_v8 = vld [vmem:[%s4949_s8 + $0xd8] sm:$0xff] }
 0x1ef   :  { %3320 = vmatprep.subr.mxu0 %v2646_v18  ;;  %3356 = vmatprep.subr.mxu1 %v2679_v0  ;;  %v2677_v18 = vld [vmem:[%s4949_s8 + $0x380] sm:$0xff]  ;;  %v2591_v0 = vld [vmem:[%s4949_s8 + $0xd0] sm:$0xff] }
 0x1f0   :  { %3321 = vmatpush3.msra.mxu0 %v2630_v19  ;;  %3357 = vmatpush3.msra.mxu1 %v2663_v13  ;;  %v2574_v13 = vld [vmem:[%s4949_s8 + $0x48] sm:$0xff] }
 0x1f1   :  { %3322 = vmatprep.subr.mxu0 %v2645_v21  ;;  %3358 = vmatprep.subr.mxu1 %v2678_v14  ;;  %v2661_v21 = vld [vmem:[%s4949_s8 + $0x300] sm:$0xff] }
 0x1f2   :  { %3323 = vmatpush3.msra.mxu0 %v2629_v22  ;;  %3359 = vmatpush3.msra.mxu1 %v2662_v59  ;;  %v2573_v14 = vld [vmem:[%s4949_s8 + $0x40] sm:$0xff]  ;;  %v2587_v59 = vld [vmem:[%s4949_s8 + $0xb0] sm:$0xff] }
 0x1f3   :  { %3368 = vmatprep.subr.mxu0 %v2596_v23  ;;  %3360 = vmatprep.subr.mxu1 %v2677_v18  ;;  %v2628_v23 = vld [vmem:[%s4949_s8 + $0x1f8] sm:$0xff]  ;;  %v2586_v18 = vld [vmem:[%s4949_s8 + $0xa8] sm:$0xff] }
 0x1f4   :  { %3361 = vmatpush3.msra.mxu1 %v2661_v21  ;;  %v2570_v21 = vld [vmem:[%s4949_s8 + $0x28] sm:$0xff] }
 0x1f5   :  { %3406 = vmatprep.subr.mxu1 %v2628_v23  ;;  %v2585_v23 = vld [vmem:[%s4949_s8 + $0xa0] sm:$0xff] }
 0x213   :  { %v1535_v3 = vpop.f32.mrf.mxu0 }
 0x214   :  { %v1536_v7 = vadd.f32 %v1535_v3, %v766_v51 }
 0x215   :  { %v1537_v55 = vpop.f32.mrf.mxu0  ;;  %v1578_v56 = vpop.f32.mrf.mxu1 }
 0x216   :  { %v1538_v40 = vadd.f32 %v1537_v55, %v770_v54  ;;  %v4687_v10 = vadd.f32 %v1578_v56, %v1536_v7  ;;  %v2593_v55 = vld [vmem:[%s4949_s8 + $0xe0] sm:$0xff] }
 0x217   :  { %v1539_v11 = vpop.f32.mrf.mxu0  ;;  %v1580_v12 = vpop.f32.mrf.mxu1  ;;  %v2577_v56 = vld [vmem:[%s4949_s8 + $0x60] sm:$0xff] }
 0x218   :  { %v1540_v57 = vadd.f32 %v1539_v11, %v766_v51  ;;  %v4695_v58 = vadd.f32 %v1580_v12, %v1538_v40  ;;  %v1495_v51 = vadd.f32 %v4644_v45, %v1452_v37  ;;  %v2578_v45 = vld [vmem:[%s4949_s8 + $0x68] sm:$0xff]  ;;  %v2576_v40 = vld [vmem:[%s4949_s8 + $0x58] sm:$0xff]  ;;  %v2575_v11 = vld [vmem:[%s4949_s8 + $0x50] sm:$0xff]  ;;  %v1728_v37 = vrot.slane %v4716_v61, %v4260_v5 }
 0x219   :  { %v1541_v15 = vpop.f32.mrf.mxu0  ;;  %v1582_v16 = vpop.f32.mrf.mxu1  ;;  %v2590_v12 = vld [vmem:[%s4949_s8 + $0xc8] sm:$0xff] }
 0x21a   :  { %v1542_v60 = vadd.f32 %v1541_v15, %v770_v54  ;;  %v4703_v17 = vadd.f32 %v1582_v16, %v1540_v57  ;;  %v2579_v54 = vld [vmem:[%s4949_s8 + $0x70] sm:$0xff]  ;;  %v2550_v34 = vmax.f32 %v1495_v51, 0.0  ;;  %v2589_v57 = vld [vmem:[%s4949_s8 + $0xc0] sm:$0xff]  ;;  %v2588_v15 = vld [vmem:[%s4949_s8 + $0xb8] sm:$0xff] }
 0x21b   :  { %v1584_v19 = vpop.f32.mrf.mxu1  ;;  %v2572_v16 = vld [vmem:[%s4949_s8 + $0x38] sm:$0xff] }
 0x21c   :  { %v4711_v22 = vadd.f32 %v1584_v19, %v1542_v60  ;;  %v2571_v60 = vld [vmem:[%s4949_s8 + $0x30] sm:$0xff]  ;;  %v758_v19 = vrot.slane %v4660_v49, %v4252_v63  ;;  %v2584_v63 = vld [vmem:[%s4949_s8 + $0x98] sm:$0xff] }
 0x21e   :  { %v1450_v49 = vadd.f32 %v4620_v35, %v758_v19  ;;  %v2582_v35 = vld [vmem:[%s4949_s8 + $0x88] sm:$0xff] }
 0x253   :  { %v2411_v25 = vpop.f32.mrf.mxu0 }
 0x254   :  { %v2412_v28 = vadd.f32 %v2411_v25, %v1720_v62  ;;  %v1456_v25 = vadd.f32 %v4672_v53, %v4724_v26  ;;  %v2566_v53 = vld [vmem:[%s4949_s8 + $0x8] sm:$0xff] }
 0x255   :  { %v2413_v29 = vpop.f32.mrf.mxu0  ;;  %v2454_v30 = vpop.f32.mrf.mxu1 }
 0x256   :  { %v2414_v31 = vadd.f32 %v2413_v29, %v1724_v24  ;;  %v2455_v2 = vadd.f32 %v2454_v30, %v2412_v28  ;;  %v2583_v28 = vld [vmem:[%s4949_s8 + $0x90] sm:$0xff]  ;;  %v1493_v30 = vadd.f32 %v4628_v38, %v1450_v49  ;;  %v1499_v26 = vadd.f32 %v4676_v27, %v1456_v25  ;;  %v2601_v49 = vld [vmem:[%s4949_s8 + $0x120] sm:$0xff]  ;;  %v2600_v25 = vld [vmem:[%s4949_s8 + $0x118] sm:$0xff] }
 0x257   :  { %v2415_v33 = vpop.f32.mrf.mxu0  ;;  %v2456_v36 = vpop.f32.mrf.mxu1  ;;  %v2567_v29 = vld [vmem:[%s4949_s8 + $0x10] sm:$0xff] }
 0x258   :  { %v2416_v39 = vadd.f32 %v2415_v33, %v1720_v62  ;;  %v2457_v41 = vadd.f32 %v2456_v36, %v2414_v31  ;;  %v2557_v9 = vmax.f32 %v2455_v2, 0.0  ;;  %v2569_v62 = vld [vmem:[%s4949_s8 + $0x20] sm:$0xff]  ;;  %v1454_v31 = vadd.f32 %v4652_v47, %v758_v19  ;;  %v2619_v19 = vld [vmem:[%s4949_s8 + $0x1b0] sm:$0xff] }
 0x259   :  { %v2417_v43 = vpop.f32.mrf.mxu0  ;;  %v2458_v44 = vpop.f32.mrf.mxu1  ;;  %v2581_v2 = vld [vmem:[%s4949_s8 + $0x80] sm:$0xff]  ;;  %v2549_v38 = vmax.f32 %v1493_v30, 0.0  ;;  %v2554_v36 = vmax.f32 %v1499_v26, 0.0  ;;  %v2598_v30 = vld [vmem:[%s4949_s8 + $0x108] sm:$0xff]  ;;  %v2551_v26 = vmax.f32 %v4687_v10, 0.0 }
 0x25a   :  { %v2558_v4 = vmax.f32 %v2457_v41, 0.0  ;;  %v2418_v46 = vadd.f32 %v2417_v43, %v1724_v24  ;;  %v2459_v48 = vadd.f32 %v2458_v44, %v2416_v39  ;;  %v2568_v24 = vld [vmem:[%s4949_s8 + $0x18] sm:$0xff]  ;;  %v2565_v33 = vld [vmem:[%s4949_s8] sm:$0xff]  ;;  %v1497_v47 = vadd.f32 %v4662_v50, %v1454_v31 }
 0x25b   :  { %v2460_v1 = vpop.f32.mrf.mxu1  ;;  %v1732_v39 = vrot.slane %v4716_v61, %v4263_v6  ;;  %v2612_v6 = vld [vmem:[%s4949_s8 + $0x178] sm:$0xff]  ;;  %v2613_v31 = vld [vmem:[%s4949_s8 + $0x180] sm:$0xff] }
 0x25c   :  { %v2461_v52 = vadd.f32 %v2460_v1, %v2418_v46  ;;  %2757 = vmatprep.mubr.f32.mxu0 %v2558_v4  ;;  %v2561_v7 = vmax.f32 %v2459_v48, 0.0  ;;  %v2553_v27 = vmax.f32 %v1497_v47, 0.0 }
 0x25d   :  { %2758 = vmatmul.mubr.f32.vlgmr.msra.gmra.mxu0 %v2557_v9 }
 0x25e   :  { %v2562_v3 = vmax.f32 %v2461_v52, 0.0  ;;  %3369 = vmatpush3.msra.mxu0 %v2580_v20 }
 0x25f   :  { %3370 = vmatprep.subr.mxu0 %v2595_v42 }
 0x260   :  { %3371 = vmatpush3.msra.mxu0 %v2579_v54  ;;  %2762 = vmatprep.mubr.f32.mxu0 %v2562_v3 }
 0x261   :  { %3372 = vmatprep.subr.mxu0 %v2594_v32  ;;  %2763 = vmatmul.mubr.f32.gmra.mxu0 %v2561_v7  ;;  %v2627_v7 = vld [vmem:[%s4949_s8 + $0x1f0] sm:$0xff] }
 0x262   :  { %3373 = vmatpush3.msra.mxu0 %v2578_v45  ;;  %2907 = vmatprep.mubr.f32.mxu0 %v2550_v34  ;;  %v2611_v45 = vld [vmem:[%s4949_s8 + $0x170] sm:$0xff] }
 0x263   :  { %3374 = vmatprep.subr.mxu0 %v2593_v55  ;;  %v2626_v55 = vld [vmem:[%s4949_s8 + $0x1e8] sm:$0xff] }
 0x264   :  { %3375 = vmatpush3.msra.mxu0 %v2577_v56 }
 0x265   :  { %3376 = vmatprep.subr.mxu0 %v2592_v8  ;;  %v2610_v8 = vld [vmem:[%s4949_s8 + $0x168] sm:$0xff] }
 0x266   :  { %3377 = vmatpush3.msra.mxu0 %v2576_v40  ;;  %v2552_v40 = vmax.f32 %v4695_v58, 0.0  ;;  %v2608_v58 = vld [vmem:[%s4949_s8 + $0x158] sm:$0xff] }
 0x267   :  { %3378 = vmatprep.subr.mxu0 %v2591_v0  ;;  %v2625_v0 = vld [vmem:[%s4949_s8 + $0x1e0] sm:$0xff] }
 0x268   :  { %3379 = vmatpush3.msra.mxu0 %v2575_v11  ;;  %v2609_v11 = vld [vmem:[%s4949_s8 + $0x160] sm:$0xff] }
 0x269   :  { %3380 = vmatprep.subr.mxu0 %v2590_v12  ;;  %v2624_v12 = vld [vmem:[%s4949_s8 + $0x1d8] sm:$0xff] }
 0x26a   :  { %3381 = vmatpush3.msra.mxu0 %v2574_v13  ;;  %v2623_v13 = vld [vmem:[%s4949_s8 + $0x1d0] sm:$0xff] }
 0x26b   :  { %3382 = vmatprep.subr.mxu0 %v2589_v57  ;;  %v2607_v57 = vld [vmem:[%s4949_s8 + $0x150] sm:$0xff] }
 0x26c   :  { %3383 = vmatpush3.msra.mxu0 %v2573_v14  ;;  %v2622_v14 = vld [vmem:[%s4949_s8 + $0x1c8] sm:$0xff] }
 0x26d   :  { %3384 = vmatprep.subr.mxu0 %v2588_v15  ;;  %v2606_v15 = vld [vmem:[%s4949_s8 + $0x148] sm:$0xff] }
 0x26e   :  { %3385 = vmatpush3.msra.mxu0 %v2572_v16  ;;  %v2621_v16 = vld [vmem:[%s4949_s8 + $0x1c0] sm:$0xff] }
 0x26f   :  { %3386 = vmatprep.subr.mxu0 %v2587_v59  ;;  %v2605_v59 = vld [vmem:[%s4949_s8 + $0x140] sm:$0xff] }
 0x270   :  { %3387 = vmatpush3.msra.mxu0 %v2571_v60  ;;  %v2620_v60 = vld [vmem:[%s4949_s8 + $0x1b8] sm:$0xff] }
 0x271   :  { %3388 = vmatprep.subr.mxu0 %v2586_v18  ;;  %v2604_v18 = vld [vmem:[%s4949_s8 + $0x138] sm:$0xff] }
 0x272   :  { %3389 = vmatpush3.msra.mxu0 %v2570_v21  ;;  %v2603_v21 = vld [vmem:[%s4949_s8 + $0x130] sm:$0xff] }
 0x273   :  { %3390 = vmatprep.subr.mxu0 %v2585_v23  ;;  %v2618_v23 = vld [vmem:[%s4949_s8 + $0x1a8] sm:$0xff] }
 0x274   :  { %3391 = vmatpush3.msra.mxu0 %v2569_v62  ;;  %v2602_v62 = vld [vmem:[%s4949_s8 + $0x128] sm:$0xff] }
 0x275   :  { %3392 = vmatprep.subr.mxu0 %v2584_v63  ;;  %v2617_v63 = vld [vmem:[%s4949_s8 + $0x1a0] sm:$0xff] }
 0x276   :  { %3393 = vmatpush3.msra.mxu0 %v2568_v24  ;;  %v2616_v24 = vld [vmem:[%s4949_s8 + $0x198] sm:$0xff] }
 0x277   :  { %3394 = vmatprep.subr.mxu0 %v2583_v28  ;;  %v2615_v28 = vld [vmem:[%s4949_s8 + $0x190] sm:$0xff] }
 0x278   :  { %3395 = vmatpush3.msra.mxu0 %v2567_v29  ;;  %v2599_v29 = vld [vmem:[%s4949_s8 + $0x110] sm:$0xff] }
 0x279   :  { %3396 = vmatprep.subr.mxu0 %v2582_v35  ;;  %v2614_v35 = vld [vmem:[%s4949_s8 + $0x188] sm:$0xff] }
 0x27a   :  { %3397 = vmatpush3.msra.mxu0 %v2566_v53  ;;  %v2597_v53 = vld [vmem:[%s4949_s8 + $0x100] sm:$0xff] }
 0x27b   :  { %3398 = vmatprep.subr.mxu0 %v2581_v2  ;;  %v2556_v2 = vmax.f32 %v4711_v22, 0.0 }
 0x27c   :  { %3399 = vmatpush3.msra.mxu0 %v2565_v33  ;;  %v2555_v33 = vmax.f32 %v4703_v17, 0.0 }
 0x27d   :  { %2908 = vmatmul.mubr.f32.vlgmr.msra.gmra.mxu0 %v2549_v38 }
 0x27e   :  { %2912 = vmatprep.mubr.f32.mxu0 %v2554_v36 }
 0x281   :  { %2913 = vmatmul.mubr.f32.gmra.mxu0 %v2553_v27 }
 0x293   :  { %v2497_v41 = vpop.f32.mrf.mxu0 }
 0x294   :  { %v2498_v43 = vadd.f32 %v2497_v41, %v1728_v37 }
 0x295   :  { %v2499_v44 = vpop.f32.mrf.mxu0  ;;  %v2540_v4 = vpop.f32.mrf.mxu1 }
 0x296   :  { %v2500_v46 = vadd.f32 %v2499_v44, %v1732_v39  ;;  %v2541_v9 = vadd.f32 %v2540_v4, %v2498_v43 }
 0x297   :  { %v2501_v50 = vpop.f32.mrf.mxu0  ;;  %v2542_v48 = vpop.f32.mrf.mxu1 }
 0x298   :  { %v2502_v1 = vadd.f32 %v2501_v50, %v1728_v37  ;;  %v2543_v20 = vadd.f32 %v2542_v48, %v2500_v46  ;;  %v2559_v3 = vmax.f32 %v2541_v9, 0.0 }
 0x299   :  { %v2503_v51 = vpop.f32.mrf.mxu0  ;;  %v2544_v52 = vpop.f32.mrf.mxu1 }
 0x29a   :  { %v2560_v42 = vmax.f32 %v2543_v20, 0.0  ;;  %v2504_v54 = vadd.f32 %v2503_v51, %v1732_v39  ;;  %v2545_v32 = vadd.f32 %v2544_v52, %v2502_v1 }
 0x29b   :  { %v2546_v5 = vpop.f32.mrf.mxu1 }
 0x29c   :  { %v2547_v61 = vadd.f32 %v2546_v5, %v2504_v54  ;;  %2832 = vmatprep.mubr.f32.mxu1 %v2560_v42  ;;  %v2563_v56 = vmax.f32 %v2545_v32, 0.0 }
 0x29d   :  { %2833 = vmatmul.mubr.f32.vlgmr.msra.gmra.mxu1 %v2559_v3  ;;  %v3291_v3 = vld [vmem:[%s4950_s9] ss:$0 sm:$0xff] }
 0x29e   :  { %v2564_v34 = vmax.f32 %v2547_v61, 0.0  ;;  %3407 = vmatpush3.msra.mxu1 %v2612_v6 }
 0x29f   :  { %3408 = vmatprep.subr.mxu1 %v2627_v7 }
 0x2a0   :  { %3409 = vmatpush3.msra.mxu1 %v2611_v45  ;;  %2837 = vmatprep.mubr.f32.mxu1 %v2564_v34 }
 0x2a1   :  { %3410 = vmatprep.subr.mxu1 %v2626_v55  ;;  %2838 = vmatmul.mubr.f32.gmra.mxu1 %v2563_v56 }
 0x2a2   :  { %3411 = vmatpush3.msra.mxu1 %v2610_v8  ;;  %2982 = vmatprep.mubr.f32.mxu1 %v2552_v40 }
 0x2a3   :  { %3412 = vmatprep.subr.mxu1 %v2625_v0 }
 0x2a4   :  { %3413 = vmatpush3.msra.mxu1 %v2609_v11 }
 0x2a5   :  { %3414 = vmatprep.subr.mxu1 %v2624_v12 }
 0x2a6   :  { %3415 = vmatpush3.msra.mxu1 %v2608_v58 }
 0x2a7   :  { %3416 = vmatprep.subr.mxu1 %v2623_v13 }
 0x2a8   :  { %3417 = vmatpush3.msra.mxu1 %v2607_v57 }
 0x2a9   :  { %3418 = vmatprep.subr.mxu1 %v2622_v14 }
 0x2aa   :  { %3419 = vmatpush3.msra.mxu1 %v2606_v15 }
 0x2ab   :  { %3420 = vmatprep.subr.mxu1 %v2621_v16 }
 0x2ac   :  { %3421 = vmatpush3.msra.mxu1 %v2605_v59 }
 0x2ad   :  { %3422 = vmatprep.subr.mxu1 %v2620_v60 }
 0x2ae   :  { %3423 = vmatpush3.msra.mxu1 %v2604_v18 }
 0x2af   :  { %3424 = vmatprep.subr.mxu1 %v2619_v19 }
 0x2b0   :  { %3425 = vmatpush3.msra.mxu1 %v2603_v21 }
 0x2b1   :  { %3426 = vmatprep.subr.mxu1 %v2618_v23 }
 0x2b2   :  { %3427 = vmatpush3.msra.mxu1 %v2602_v62 }
 0x2b3   :  { %3428 = vmatprep.subr.mxu1 %v2617_v63 }
 0x2b4   :  { %3429 = vmatpush3.msra.mxu1 %v2601_v49 }
 0x2b5   :  { %3430 = vmatprep.subr.mxu1 %v2616_v24 }
 0x2b6   :  { %3431 = vmatpush3.msra.mxu1 %v2600_v25 }
 0x2b7   :  { %3432 = vmatprep.subr.mxu1 %v2615_v28 }
 0x2b8   :  { %3433 = vmatpush3.msra.mxu1 %v2599_v29 }
 0x2b9   :  { %3434 = vmatprep.subr.mxu1 %v2614_v35 }
 0x2ba   :  { %3435 = vmatpush3.msra.mxu1 %v2598_v30 }
 0x2bb   :  { %3436 = vmatprep.subr.mxu1 %v2613_v31 }
 0x2bc   :  { %3437 = vmatpush3.msra.mxu1 %v2597_v53 }
 0x2bd   :  { %2983 = vmatmul.mubr.f32.vlgmr.msra.gmra.mxu1 %v2551_v26 }
 0x2be   :  { %2987 = vmatprep.mubr.f32.mxu1 %v2556_v2 }
 0x2c1   :  { %2988 = vmatmul.mubr.f32.gmra.mxu1 %v2555_v33 }
 0x31d   :  { %v3324_v38 = vpop.f32.mrf.mxu0 }
 0x31f   :  { %v3325_v47 = vpop.f32.mrf.mxu0 }
 0x320   :  { %v3326_v46 = vadd.f32 %v3325_v47, %v3324_v38 }
 0x321   :  { %v3327_v36 = vpop.f32.mrf.mxu0 }
 0x323   :  { %v3328_v37 = vpop.f32.mrf.mxu0 }
 0x324   :  { %v3329_v1 = vadd.f32 %v3328_v37, %v3327_v36 }
 0x33d   :  { %v3400_v41 = vpop.f32.mrf.mxu0 }
 0x33f   :  { %v3401_v44 = vpop.f32.mrf.mxu0 }
 0x340   :  { %v3402_v20 = vadd.f32 %v3401_v44, %v3400_v41 }
 0x341   :  { %v3403_v9 = vpop.f32.mrf.mxu0 }
 0x343   :  { %v3404_v17 = vpop.f32.mrf.mxu0 }
 0x344   :  { %v3405_v5 = vadd.f32 %v3404_v17, %v3403_v9 }
 0x35d   :  { %v3362_v27 = vpop.f32.mrf.mxu1 }
 0x35f   :  { %v3363_v39 = vpop.f32.mrf.mxu1 }
 0x360   :  { %v3364_v4 = vadd.f32 %v3363_v39, %v3362_v27 }
 0x361   :  { %v3365_v43 = vpop.f32.mrf.mxu1 }
 0x362   :  { %v2835_v22 = vadd.f32 %v3364_v4, %v3326_v46 }
 0x363   :  { %v3366_v10 = vpop.f32.mrf.mxu1 }
 0x364   :  { %v3367_v50 = vadd.f32 %v3366_v10, %v3365_v43  ;;  %v2910_v42 = vadd.f32 %v3402_v20, %v2835_v22 }
 0x366   :  { %v2840_v52 = vadd.f32 %v3367_v50, %v3329_v1 }
 0x368   :  { %v2915_v45 = vadd.f32 %v3405_v5, %v2840_v52 }
 0x37d   :  { %v3438_v48 = vpop.f32.mrf.mxu1 }
 0x37f   :  { %v3439_v51 = vpop.f32.mrf.mxu1 }
 0x380   :  { %v3440_v54 = vadd.f32 %v3439_v51, %v3438_v48 }
 0x381   :  { %v3441_v32 = vpop.f32.mrf.mxu1 }
 0x382   :  { %v2985_v6 = vadd.f32 %v3440_v54, %v2910_v42 }
 0x383   :  { %v3442_v61 = vpop.f32.mrf.mxu1 }
 0x384   :  { %v3000_v7 = vadd.f32 %v3291_v3, %v2985_v6  ;;  %v3443_v34 = vadd.f32 %v3442_v61, %v3441_v32 }
 0x386   :  { %3003 = vst.msk [vmem:[%s4951_s10] sm:$0xff] %vm3002_vm4, %v3000_v7  ;;  %v2990_v55 = vadd.f32 %v3443_v34, %v2915_v45 }
 0x388   :  { %v3001_v56 = vadd.f32 %v3291_v3, %v2990_v55 }
 0x38a   :  { %3004 = vst.msk [vmem:[%s4951_s10 + $0x8] sm:$0xff] %vm3002_vm4, %v3001_v56 }
 0x38b   :  { %3009 = vsyncpa [#allocation3], 1 }
 0x38c   :  { %3010 = vsyncpa [#allocation5], 1 }

</bundles_post_ra>
